<compile_context>
chip_gen: v7x
topology: tpu7x:2x2x1
jax: 0.10.0
libtpu: 0.0.40
codegen_flags: <defaults>
</compile_context>

<pallas_src>
import functools

import jax
import jax.numpy as jnp
from jax.experimental import pallas as pl
from jax.experimental.pallas import tpu as pltpu


def _linear_fea_kernel(x_ref, w_in_ref, b_in_ref, w_out_ref, b_out_ref,
                       yhat_ref, xtilde_ref, *, output_dim):
    # Stage 1: Z = X @ W_in + b_in  (bf16 operands, f32 accumulate, f32 bias add)
    x = x_ref[...]
    z = jnp.dot(x, w_in_ref[...], preferred_element_type=jnp.float32) + b_in_ref[...]

    # Stage 2 (fused heads): [Y_hat | X_tilde] = Z @ [W_y | W_x] + [b_y | b_x]
    z_lp = z.astype(w_out_ref.dtype)
    out = jnp.dot(z_lp, w_out_ref[...], preferred_element_type=jnp.float32) + b_out_ref[...]

    # Split into the two heads (static, lane-aligned slices at the demo shapes).
    yhat_ref[...] = out[:, :output_dim].astype(yhat_ref.dtype)
    xtilde_ref[...] = out[:, output_dim:].astype(xtilde_ref.dtype)


def linear_fea_forward(x, packed, *, tile_b=256, out_dtype=None):
    """Fused forward pass of LinearFEA.

    x:      [B, input_dim] (any float dtype; cast to the packed compute dtype)
    packed: dict from `pack_params`:
        w_in  [input_dim, hidden_dim]            (compute dtype, e.g. bf16)
        b_in  [1, hidden_dim]                    (f32)
        w_out [hidden_dim, output_dim+input_dim] (compute dtype) = [W_y | W_x]
        b_out [1, output_dim+input_dim]          (f32)            = [b_y | b_x]
    returns (Y_hat [B, output_dim], X_tilde [B, input_dim])
    """
    B, input_dim = x.shape
    hidden_dim = packed["w_in"].shape[1]
    total_out = packed["w_out"].shape[1]
    output_dim = total_out - input_dim
    out_dtype = out_dtype or x.dtype
    compute_dtype = packed["w_in"].dtype

    tile_b = min(tile_b, B)
    assert tile_b == B or tile_b % 8 == 0, "tile_b must be a multiple of 8 (sublanes)"

    x_lp = x.astype(compute_dtype)
    grid = (pl.cdiv(B, tile_b),)

    yhat, xtilde = pl.pallas_call(
        functools.partial(_linear_fea_kernel, output_dim=output_dim),
        out_shape=(
            jax.ShapeDtypeStruct((B, output_dim), out_dtype),
            jax.ShapeDtypeStruct((B, input_dim), out_dtype),
        ),
        grid=grid,
        in_specs=[
            # Activations: new tile per grid step (double-buffered by Pallas).
            pl.BlockSpec((tile_b, input_dim), lambda i: (i, 0)),
            # Weights/biases: constant block index -> stay resident in VMEM.
            pl.BlockSpec((input_dim, hidden_dim), lambda i: (0, 0)),
            pl.BlockSpec((1, hidden_dim), lambda i: (0, 0)),
            pl.BlockSpec((hidden_dim, total_out), lambda i: (0, 0)),
            pl.BlockSpec((1, total_out), lambda i: (0, 0)),
        ],
        out_specs=(
            pl.BlockSpec((tile_b, output_dim), lambda i: (i, 0)),
            pl.BlockSpec((tile_b, input_dim), lambda i: (i, 0)),
        ),
        compiler_params=pltpu.CompilerParams(
            dimension_semantics=("parallel",),   # shards batch tiles across TCs on v7x
            vmem_limit_bytes=32 * 1024 * 1024,   # safe on v5e/v6e (128 MiB) and v7x (64 MiB)
        ),
    )(x_lp, packed["w_in"], packed["b_in"], packed["w_out"], packed["b_out"])
    return yhat, xtilde


def init_params(key, input_dim, hidden_dim, output_dim, dtype=jnp.float32):
    """Deterministic init mirroring nn.Linear's U(-1/sqrt(fan_in), 1/sqrt(fan_in)).

    Weights are stored as [in, out] (transpose of PyTorch's [out, in]).
    """
    ks = jax.random.split(key, 6)

    def uniform(k, shape, fan_in):
        bound = 1.0 / jnp.sqrt(jnp.asarray(fan_in, dtype))
        return jax.random.uniform(k, shape, dtype, minval=-bound, maxval=bound)

    return {
        "w_in": uniform(ks[0], (input_dim, hidden_dim), input_dim),
        "b_in": uniform(ks[1], (1, hidden_dim), input_dim),
        "w_y":  uniform(ks[2], (hidden_dim, output_dim), hidden_dim),
        "b_y":  uniform(ks[3], (1, output_dim), hidden_dim),
        "w_x":  uniform(ks[4], (hidden_dim, input_dim), hidden_dim),
        "b_x":  uniform(ks[5], (1, input_dim), hidden_dim),
    }


def pack_params(params, compute_dtype=jnp.bfloat16):
    """Concatenate the two second-stage heads and cast weights to the MXU dtype."""
    return {
        "w_in": params["w_in"].astype(compute_dtype),
        "b_in": params["b_in"].astype(jnp.float32),
        "w_out": jnp.concatenate([params["w_y"], params["w_x"]], axis=1).astype(compute_dtype),
        "b_out": jnp.concatenate([params["b_y"], params["b_x"]], axis=1).astype(jnp.float32),
    }


if __name__ == "__main__":
    # MXU/lane-friendly small shapes consistent with the module (Linear stack on
    # [batch, features]); batch large enough to exercise the batch grid.
    B, INPUT_DIM, HIDDEN_DIM, OUTPUT_DIM = 512, 128, 256, 512
    TILE_B = 256

    key = jax.random.PRNGKey(0)
    k_x, k_p = jax.random.split(key)
    x = jax.random.normal(k_x, (B, INPUT_DIM), dtype=jnp.float32)
    params = init_params(k_p, INPUT_DIM, HIDDEN_DIM, OUTPUT_DIM)
    packed = pack_params(params, compute_dtype=jnp.bfloat16)

    yhat, xtilde = linear_fea_forward(x, packed, tile_b=TILE_B)
    jax.block_until_ready((yhat, xtilde))

    # Pure-JAX reference using the same bf16 operands / f32 accumulation.
    x_lp = x.astype(jnp.bfloat16)
    z_ref = jnp.dot(x_lp, packed["w_in"], preferred_element_type=jnp.float32) + packed["b_in"]
    out_ref = jnp.dot(z_ref.astype(jnp.bfloat16), packed["w_out"],
                      preferred_element_type=jnp.float32) + packed["b_out"]
    yhat_ref = out_ref[:, :OUTPUT_DIM]
    xtilde_ref = out_ref[:, OUTPUT_DIM:]

    assert yhat.shape == (B, OUTPUT_DIM) and xtilde.shape == (B, INPUT_DIM)
    assert jnp.allclose(yhat, yhat_ref, atol=2e-2, rtol=2e-2)
    assert jnp.allclose(xtilde, xtilde_ref, atol=2e-2, rtol=2e-2)

    # Looser sanity check against a full-f32 reference (bf16 operand rounding only).
    z_f32 = x @ params["w_in"] + params["b_in"]
    yhat_f32 = z_f32 @ params["w_y"] + params["b_y"]
    xtilde_f32 = z_f32 @ params["w_x"] + params["b_x"]
    assert jnp.allclose(yhat, yhat_f32, atol=5e-2, rtol=5e-2)
    assert jnp.allclose(xtilde, xtilde_f32, atol=5e-2, rtol=5e-2)

    print("KERNEL_OK")
</pallas_src>

<mosaic_0001>
module attributes {stable_mosaic.version = 11 : i64} {
  func.func @_linear_fea_kernel(%arg0: i32, %arg1: memref<256x128xbf16, #tpu.memory_space<vmem>>, %arg2: memref<128x256xbf16, #tpu.memory_space<vmem>>, %arg3: memref<1x256xf32, #tpu.memory_space<vmem>>, %arg4: memref<256x640xbf16, #tpu.memory_space<vmem>>, %arg5: memref<1x640xf32, #tpu.memory_space<vmem>>, %arg6: memref<256x512xf32, #tpu.memory_space<vmem>>, %arg7: memref<256x128xf32, #tpu.memory_space<vmem>>) attributes {dimension_semantics = [#tpu.dimension_semantics<parallel>], iteration_bounds = array<i64: 2>, scalar_prefetch = 0 : i64, scratch_operands = 0 : i64, tpu.core_type = #tpu.core_type<tc>, window_params = [{transform_indices = @transform_0, window_bounds = array<i64: 256, 128>}, {pipeline_mode = #tpu.pipeline_mode<synchronous>, transform_indices = @transform_1, window_bounds = array<i64: 128, 256>}, {pipeline_mode = #tpu.pipeline_mode<synchronous>, transform_indices = @transform_2, window_bounds = array<i64: 1, 256>}, {pipeline_mode = #tpu.pipeline_mode<synchronous>, transform_indices = @transform_3, window_bounds = array<i64: 256, 640>}, {pipeline_mode = #tpu.pipeline_mode<synchronous>, transform_indices = @transform_4, window_bounds = array<i64: 1, 640>}, {transform_indices = @transform_5, window_bounds = array<i64: 256, 512>}, {transform_indices = @transform_6, window_bounds = array<i64: 256, 128>}]} {
    %c0 = arith.constant 0 : index
    %c0_0 = arith.constant 0 : index
    %0 = vector.load %arg1[%c0, %c0_0] : memref<256x128xbf16, #tpu.memory_space<vmem>>, vector<256x128xbf16>
    %c0_1 = arith.constant 0 : index
    %c0_2 = arith.constant 0 : index
    %1 = vector.load %arg2[%c0_1, %c0_2] : memref<128x256xbf16, #tpu.memory_space<vmem>>, vector<128x256xbf16>
    %cst = arith.constant dense<0.000000e+00> : vector<256x256xf32>
    %2 = tpu.matmul %0, %1, %cst {dimension_numbers = #tpu.dot_dimension_numbers<[1], [0], [0], [1], [0, 0, 1, 1], [], []>} : vector<256x128xbf16>, vector<128x256xbf16>, vector<256x256xf32> -> vector<256x256xf32>
    %c0_3 = arith.constant 0 : index
    %c0_4 = arith.constant 0 : index
    %3 = vector.load %arg3[%c0_3, %c0_4] : memref<1x256xf32, #tpu.memory_space<vmem>>, vector<1x256xf32>
    %4 = vector.broadcast %3 : vector<1x256xf32> to vector<256x256xf32>
    %5 = arith.addf %2, %4 : vector<256x256xf32>
    %6 = arith.truncf %5 : vector<256x256xf32> to vector<256x256xbf16>
    %c0_5 = arith.constant 0 : index
    %c0_6 = arith.constant 0 : index
    %7 = vector.load %arg4[%c0_5, %c0_6] : memref<256x640xbf16, #tpu.memory_space<vmem>>, vector<256x640xbf16>
    %cst_7 = arith.constant dense<0.000000e+00> : vector<256x640xf32>
    %8 = tpu.matmul %6, %7, %cst_7 {dimension_numbers = #tpu.dot_dimension_numbers<[1], [0], [0], [1], [0, 0, 1, 1], [], []>} : vector<256x256xbf16>, vector<256x640xbf16>, vector<256x640xf32> -> vector<256x640xf32>
    %c0_8 = arith.constant 0 : index
    %c0_9 = arith.constant 0 : index
    %9 = vector.load %arg5[%c0_8, %c0_9] : memref<1x640xf32, #tpu.memory_space<vmem>>, vector<1x640xf32>
    %10 = vector.broadcast %9 : vector<1x640xf32> to vector<256x640xf32>
    %11 = arith.addf %8, %10 : vector<256x640xf32>
    %12 = vector.extract_strided_slice %11 {offsets = [0, 0], sizes = [256, 512], strides = [1, 1]} : vector<256x640xf32> to vector<256x512xf32>
    %c0_10 = arith.constant 0 : index
    %c0_11 = arith.constant 0 : index
    %13 = vector.load %arg6[%c0_10, %c0_11] : memref<256x512xf32, #tpu.memory_space<vmem>>, vector<256x512xf32>
    tpu.vector_store %arg6[%c0_10, %c0_11], %12 {strides = array<i32>} : memref<256x512xf32, #tpu.memory_space<vmem>>, vector<256x512xf32>,
    %14 = vector.extract_strided_slice %11 {offsets = [0, 512], sizes = [256, 128], strides = [1, 1]} : vector<256x640xf32> to vector<256x128xf32>
    %c0_12 = arith.constant 0 : index
    %c0_13 = arith.constant 0 : index
    %15 = vector.load %arg7[%c0_12, %c0_13] : memref<256x128xf32, #tpu.memory_space<vmem>>, vector<256x128xf32>
    tpu.vector_store %arg7[%c0_12, %c0_13], %14 {strides = array<i32>} : memref<256x128xf32, #tpu.memory_space<vmem>>, vector<256x128xf32>,
    return
  }
  func.func @transform_0(%arg0: i32) -> (i32, i32) {
    %c0_i32 = arith.constant 0 : i32
    %c0_i32_0 = arith.constant 0 : i32
    return %arg0, %c0_i32 : i32, i32
  }
  func.func @transform_1(%arg0: i32) -> (i32, i32) {
    %c0_i32 = arith.constant 0 : i32
    %c0_i32_0 = arith.constant 0 : i32
    %c0_i32_1 = arith.constant 0 : i32
    return %c0_i32, %c0_i32_0 : i32, i32
  }
  func.func @transform_2(%arg0: i32) -> (i32, i32) {
    %c0_i32 = arith.constant 0 : i32
    %c0_i32_0 = arith.constant 0 : i32
    %c0_i32_1 = arith.constant 0 : i32
    return %c0_i32, %c0_i32_0 : i32, i32
  }
  func.func @transform_3(%arg0: i32) -> (i32, i32) {
    %c0_i32 = arith.constant 0 : i32
    %c0_i32_0 = arith.constant 0 : i32
    %c0_i32_1 = arith.constant 0 : i32
    return %c0_i32, %c0_i32_0 : i32, i32
  }
  func.func @transform_4(%arg0: i32) -> (i32, i32) {
    %c0_i32 = arith.constant 0 : i32
    %c0_i32_0 = arith.constant 0 : i32
    %c0_i32_1 = arith.constant 0 : i32
    return %c0_i32, %c0_i32_0 : i32, i32
  }
  func.func @transform_5(%arg0: i32) -> (i32, i32) {
    %c0_i32 = arith.constant 0 : i32
    %c0_i32_0 = arith.constant 0 : i32
    return %arg0, %c0_i32 : i32, i32
  }
  func.func @transform_6(%arg0: i32) -> (i32, i32) {
    %c0_i32 = arith.constant 0 : i32
    %c0_i32_0 = arith.constant 0 : i32
    return %arg0, %c0_i32 : i32, i32
  }
}

</mosaic_0001>

<bundles_post_ra>
// kernel: tpu_custom_call.1
= control target key start
LH: loop header
LB: loop body
LE: loop exit
PB: predicated region body
PF: predicated region fallthrough
CT: control target
= control target key end

     0   :  { %12 = vsyncpa [#allocation3], 0  ;;  %s3818_s0 = inlined_call_operand.hbm [shape: bf16[512,128], index: 0, kind: input, shape index: {}]   ;;  %s3819_s1 = inlined_call_operand.hbm [shape: bf16[128,256], index: 1, kind: input, shape index: {}]   ;;  %s3820_s2 = inlined_call_operand.vmem [shape: f32[1,256], index: 2, kind: input, shape index: {}]   ;;  %s3821_s3 = inlined_call_operand.hbm [shape: bf16[256,640], index: 3, kind: input, shape index: {}]   ;;  %s3822_s4 = inlined_call_operand.vmem [shape: f32[1,640], index: 4, kind: input, shape index: {}]   ;;  %s3823_s5 = inlined_call_operand.hbm [shape: f32[512,512], index: 5, kind: output, shape index: {0}]   ;;  %s3824_s6 = inlined_call_operand.hbm [shape: f32[512,128], index: 6, kind: output, shape index: {1}]  }
   0x1   :  { %14 = vsyncpa [#allocation3 + $0x1], 0 }
   0x2   :  { %15 = vsyncpa [#allocation6], 0 }
   0x3   :  { %16 = vsyncpa [#allocation4], 0 }
   0x4   :  { %18 = vsyncpa [#allocation4 + $0x1], 0 }
   0x5   :  { %19 = vsyncpa [#allocation10], 0 }
   0x6   :  { %21 = vsyncpa [#allocation10 + $0x1], 0  ;;  %s2924_s21 = smov 0   ;;  %s2926_s22 = smov 0  }
   0x7   :  { %s2928_s23 = smov 0   ;;  %s2930_s24 = smov 0  }
   0x8 LB: > { %s2945_s25 = sadd.s32 4294967295, %s2871_s24   ;;  %s2181_s26 = sadd.s32 4294967294, %s2871_s24   ;;  %s2871_s24 = sphi %s2930_s24, %s3844_s24   ;;  %s2867_s23 = sphi %s2928_s23, %s3843_s23   ;;  %s2863_s22 = sphi %s2926_s22, %s3842_s22   ;;  %s2859_s21 = sphi %s2924_s21, %s3841_s21  }
   0x9   : > { %p47_p0 = scmp.ne.s32.totalorder %s2863_s22, %s2859_s21  ;;  %p3825_p1 = scmp.eq.s32.totalorder %s2945_s25, 0 }
   0xa   : > { %p161_p3 = scmp.eq.s32.totalorder %s2181_s26, 1  ;;  %p2182_p5 = scmp.ge.s32.totalorder %s2871_s24, 1 }
   0xb   : > { %p2954_p4 = por %p3825_p1, %p47_p0  ;;  %p194_p7 = scmp.lt.s32.totalorder %s2871_s24, 3 }
   0xc   : > { %p2959_p6 = por %p161_p3, %p47_p0  ;;  %s2873_s30 = smov [#allocation5]  }
   0xd   : > { %s3828_s27 = scalar_select %p2954_p4, 1, 0 }
   0xe   : > { %s3829_s28 = scalar_select %p2959_p6, 1, 0 }
   0xf   : > { %p2964_p8 = pnand %p2182_p5, %p194_p7  ;;  %s206_s7 = sshll.u32 %s2873_s30, 4  ;;  %s2968_s7 = int_to_ptr.vmem [resolvable:$true] %s206_s7 }
  0x10   : > { %s2874_s9 = smov [#allocation7]   ;;  %s2683_s13 = scalar_lea.hbm %s3819_s1, 2048 }
  0x11   : > { %p2462_p9 = pneg %p2964_p8  ;;  %s222_s10 = sshll.u32 %s2874_s9, 4  ;;  %s2979_s10 = int_to_ptr.vmem [resolvable:$true] %s222_s10 }
  0x12   : > { %p2684_p12 = scmp.ne.s32.totalorder %s3819_s1, %s2683_s13  ;;  %p2690_p5 = scmp.lt.u32.totalorder %s2683_s13, %s3819_s1 }
  0x13   : > { %p2975_p11 = pnand %p2462_p9, %p3825_p1 }
  0x15   : > { %p2685_p13 = pneg %p2975_p11 }
  0x17   : > { %p2686_p0 = pnand %p2685_p13, %p2684_p12 }
  0x19   : > { %p2687_p3 = pneg %p2686_p0 }
  0x1b   : > { %p2692_p7 = pnand %p2690_p5, %p2687_p3 }
  0x1d   : > { %2695 = shalt.err (!%p2692_p7)
}
  0x1e   : > { %s2696_s18 = scalar_lea.vmem %s2968_s7, 2048  ;;  %p2704_p2 = scmp.lt.s32.totalorder %s2968_s7, %s2968_s7 }
  0x1f   : > { %p2697_p9 = scmp.ne.s32.totalorder %s2968_s7, %s2696_s18  ;;  %p2705_p12 = scmp.lt.s32.totalorder %s2696_s18, %s2696_s18 }
  0x21   : > { %p2699_p10 = pnand %p2697_p9, %p2685_p13  ;;  %p2706_p0 = por %p2705_p12, %p2704_p2 }
  0x23   : > { %p2700_p1 = pneg %p2699_p10 }
  0x25   : > { %p2707_p6 = pnand %p2706_p0, %p2700_p1 }
  0x27   : > { %2710 = shalt.err (!%p2707_p6)
}
  0x28   : > { %s2875_s19 = smov 128   ;;  %s2876_s20 = smov 8  }
  0x29   : > { %2465 = dma.hbm_to_vmem [thread:$0]  (!%p2975_p11), %s3819_s1, 2048, %s2968_s7, [#allocation6], %s2875_s19, %s2875_s19, %s2876_s20  }
  0x2a   : > { %s2711_s12 = scalar_lea.hbm %s3821_s3, 10240 }
  0x2b   : > { %p2712_p2 = scmp.ne.s32.totalorder %s3821_s3, %s2711_s12  ;;  %p2718_p10 = scmp.lt.u32.totalorder %s2711_s12, %s3821_s3 }
  0x2d   : > { %p2714_p1 = pnand %p2712_p2, %p2685_p13 }
  0x2f   : > { %p2715_p6 = pneg %p2714_p1 }
  0x31   : > { %p2720_p3 = pnand %p2718_p10, %p2715_p6 }
  0x33   : > { %2723 = shalt.err (!%p2720_p3)
}
  0x34   : > { %s2724_s7 = scalar_lea.vmem %s2979_s10, 10240  ;;  %p2732_p12 = scmp.lt.s32.totalorder %s2979_s10, %s2979_s10 }
  0x35   : > { %p2725_p5 = scmp.ne.s32.totalorder %s2979_s10, %s2724_s7  ;;  %p2733_p0 = scmp.lt.s32.totalorder %s2724_s7, %s2724_s7 }
  0x37   : > { %p2727_p7 = pnand %p2725_p5, %p2685_p13  ;;  %p2734_p2 = por %p2733_p0, %p2732_p12 }
  0x39   : > { %p2728_p9 = pneg %p2727_p7 }
  0x3b   : > { %p2735_p1 = pnand %p2734_p2, %p2728_p9 }
  0x3d   : > { %2738 = shalt.err (!%p2735_p1)
}
  0x3e   : > { %s2877_s17 = smov 320   ;;  %s2878_s18 = smov 20  }
  0x3f   : > { %2468 = dma.hbm_to_vmem [thread:$0]  (!%p2975_p11), %s3821_s3, 10240, %s2979_s10, [#allocation6], %s2877_s17, %s2877_s17, %s2878_s18  }
  0x40   : > { %s3034_s26 = sadd.s32 1, %s2871_s24   ;;  %s34_s9 = sadd.s32 1, %s2867_s23 }
  0x41   : > { %s31_s30 = ssub.s32 %s2871_s24, %s3034_s26  ;;  %p41_p6 = scmp.ne.s32.totalorder %s2867_s23, %s2863_s22 }
  0x42   : > { %p32_p13 = scmp.eq.s32.totalorder %s31_s30, 0  ;;  %p42_p10 = scmp.eq.s32.totalorder %s2871_s24, 0 }
  0x43   : > { %p3832_p5 = scmp.eq.s32.totalorder %s2945_s25, 1  ;;  %p2482_p9 = scmp.lt.s32.totalorder %s2871_s24, 2 }
  0x44   : > { %s3043_s11 = scalar_select %p32_p13, %s2867_s23, %s34_s9  }
  0x45   : > { %p43_p3 = por %p42_p10, %p41_p6  ;;  %p3047_p7 = por %p3832_p5, %p41_p6 }
  0x46   : > { %s239_s8 = sand.u32 1, %s2867_s23   ;;  %s2316_s10 = sshll.u32 %s2871_s24, 11 }
  0x47   : > { %s3833_s12 = scalar_select %p3047_p7, 1, 0 }
  0x48   : > { %s2186_s13 = sshll.u32 %s239_s8, 7  ;;  %s3057_s16 = scalar_lea.hbm %s3818_s0, %s2316_s10 }
  0x49   : > { %s243_s7 = scalar_lea.vmem [#allocation2], %s2186_s13  ;;  %p3061_p11 = pnand %p2482_p9, %p43_p3 }
  0x4a   : > { %s250_s17 = sshll.u32 %s243_s7, 4  ;;  %s3065_s19 = scalar_lea.sflag [#allocation3], %s239_s8  ;;  %s3059_s17 = int_to_ptr.vmem [resolvable:$true] %s250_s17 }
  0x4b   : > { %s2739_s20 = scalar_lea.hbm %s3057_s16, 2048  ;;  %p2741_p0 = pneg %p3061_p11 }
  0x4c   : > { %p2740_p12 = scmp.ne.s32.totalorder %s3057_s16, %s2739_s20  ;;  %s2744_s13 = scalar_lea.hbm %s3818_s0, 4096 }
  0x4d   : > { %p2745_p13 = scmp.lt.u32.totalorder %s3057_s16, %s3818_s0  ;;  %p2746_p6 = scmp.lt.u32.totalorder %s2744_s13, %s2739_s20 }
  0x4e   : > { %p2742_p2 = pnand %p2741_p0, %p2740_p12  ;;  %p2748_p3 = scmp.lt.u32.totalorder %s2739_s20, %s3057_s16 }
  0x4f   : > { %p2747_p10 = por %p2746_p6, %p2745_p13 }
  0x50   : > { %p2743_p1 = pneg %p2742_p2 }
  0x51   : > { %p2749_p5 = por %p2748_p3, %p2747_p10 }
  0x53   : > { %p2750_p9 = pnand %p2749_p5, %p2743_p1 }
  0x55   : > { %2753 = shalt.err (!%p2750_p9)
}
  0x56   : > { %s2754_s8 = scalar_lea.vmem %s3059_s17, 2048  ;;  %s2879_s15 = smov [#allocation2]  }
  0x57   : > { %p2755_p12 = scmp.ne.s32.totalorder %s3059_s17, %s2754_s8  ;;  %s2759_s7 = sshll.u32 %s2879_s15, 4  ;;  %s2760_s7 = int_to_ptr.vmem [resolvable:$false] %s2759_s7 }
  0x58   : > { %s2761_s30 = scalar_lea.vmem %s2760_s7, 4096  ;;  %p2762_p4 = scmp.lt.s32.totalorder %s3059_s17, %s2760_s7 }
  0x59   : > { %p2757_p2 = pnand %p2755_p12, %p2741_p0  ;;  %p2763_p13 = scmp.lt.s32.totalorder %s2761_s30, %s2754_s8 }
  0x5b   : > { %p2758_p7 = pneg %p2757_p2  ;;  %p2764_p6 = por %p2763_p13, %p2762_p4 }
  0x5d   : > { %p2765_p10 = pnand %p2764_p6, %p2758_p7 }
  0x5f   : > { %2768 = shalt.err (!%p2765_p10)
}
  0x60   : > { %s2880_s20 = smov 64   ;;  %s2881_s9 = smov 4  }
  0x61   : > { %2472 = dma.hbm_to_vmem [thread:$0]  (!%p3061_p11), %s3057_s16, 2048, %s3059_s17, %s3065_s19, %s2880_s20, %s2880_s20, %s2881_s9  }
  0x62   : > { %262 = sbr.rel (%p2964_p8) target bundleno = 828 (0x33c), region = 40  ;;  %s3096_s13 = sand.u32 (!%p2964_p8), 1, %s2863_s22  }
  0x63   : > { %s2190_s10 = sshll.u32 (!%p2964_p8), %s3096_s13, 7  ;;  %s265_s14 = scalar_lea.sflag (!%p2964_p8), [#allocation3], %s3096_s13 }
  0x64   : > { %s3100_s8 = scalar_lea.vmem (!%p2964_p8), [#allocation2], %s2190_s10  ;;  %p3835_p4 = scmp.ne.s32.totalorder (!%p2964_p8), %s3828_s27, 0 }
  0x69   : > { %2842 = dma.done.wait (%p3835_p4), %s265_s14, 2048  }
  0x6a   : > { %2844 = vsyncadd (%p3835_p4), %s265_s14, 4294965248  ;;  %p3836_p7 = scmp.eq.s32.totalorder %s2945_s25, 0 }
  0x6c   : > { %2846 = dma.done.wait (%p3836_p7), [#allocation6], 12288   ;;  %p3837_p8 = pmov %p3836_p7 }
  0x6d   : > { %v2882_v0 = vmov 0   ;;  %v2531_v1 = vld [vmem:[#allocation5 + $0x4] ss:$8 sps:$4 sm:$0xff]   ;;  %v2533_v2 = vld [vmem:[#allocation5] ss:$8 sps:$4 sm:$0xff]   ;;  %v2557_v39 = vld [vmem:[%s3100_s8 + $0x10] sm:$0xff]  }
  0x6e   : > { %2848 = vsyncadd (%p3837_p8), [#allocation6], 4294955008  ;;  %582 = vmatprep.mubr.bf16.mxu0 %v2882_v0  ;;  %550 = vmatprep.subr.bf16.mxu0 %v2531_v1  ;;  %v2534_v3 = vld [vmem:[#allocation5 + $0x14] ss:$8 sps:$4 sm:$0xff]   ;;  %v2536_v4 = vld [vmem:[#allocation5 + $0x10] ss:$8 sps:$4 sm:$0xff]  }
  0x6f   : > { %551 = vmatpush1.bf16.msra.mxu0 %v2533_v2  ;;  %v2537_v5 = vld [vmem:[#allocation5 + $0x24] ss:$8 sps:$4 sm:$0xff]   ;;  %v2539_v6 = vld [vmem:[#allocation5 + $0x20] ss:$8 sps:$4 sm:$0xff]   ;;  %v2540_v7 = vld [vmem:[#allocation5 + $0x34] ss:$8 sps:$4 sm:$0xff]  }
  0x70   : > { %552 = vmatprep.subr.bf16.mxu0 %v2534_v3  ;;  %v2542_v8 = vld [vmem:[#allocation5 + $0x30] ss:$8 sps:$4 sm:$0xff]   ;;  %v2543_v9 = vld [vmem:[#allocation5 + $0x44] ss:$8 sps:$4 sm:$0xff]   ;;  %v2545_v10 = vld [vmem:[#allocation5 + $0x40] ss:$8 sps:$4 sm:$0xff]  }
  0x71   : > { %v2546_v11 = vld [vmem:[#allocation5 + $0x54] ss:$8 sps:$4 sm:$0xff]   ;;  %v2548_v12 = vld [vmem:[#allocation5 + $0x50] ss:$8 sps:$4 sm:$0xff]   ;;  %v2549_v13 = vld [vmem:[#allocation5 + $0x64] ss:$8 sps:$4 sm:$0xff]  }
  0x72   : > { %v2551_v14 = vld [vmem:[#allocation5 + $0x60] ss:$8 sps:$4 sm:$0xff]   ;;  %v2552_v15 = vld [vmem:[#allocation5 + $0x74] ss:$8 sps:$4 sm:$0xff]   ;;  %v2554_v16 = vld [vmem:[#allocation5 + $0x70] ss:$8 sps:$4 sm:$0xff]  }
  0x73   : > { %553 = vmatpush1.bf16.msra.mxu0 %v2536_v4  ;;  %v2571_v17 = vld [vmem:[#allocation7 + $0x4] ss:$20 sps:$4 sm:$0xff]   ;;  %v2573_v18 = vld [vmem:[#allocation7] ss:$20 sps:$4 sm:$0xff]   ;;  %v2579_v22 = vld [vmem:[#allocation7 + $0x28] ss:$20 sps:$4 sm:$0xff]  }
  0x74   : > { %554 = vmatprep.subr.bf16.mxu0 %v2537_v5  ;;  %v2555_v19 = vld [vmem:[%s3100_s8] sm:$0xff]   ;;  %1314 = vmatprep.subr.bf16.mxu1 %v2571_v17  ;;  %v2574_v23 = vld [vmem:[#allocation7 + $0x8] ss:$20 sps:$4 sm:$0xff]   ;;  %v2591_v31 = vld [vmem:[#allocation7 + $0x78] ss:$20 sps:$4 sm:$0xff]   ;;  %s2193_s18 = sshll.u32 %s3096_s13, 10 }
  0x75   : > { %v2576_v20 = vld [vmem:[#allocation7 + $0xc] ss:$20 sps:$4 sm:$0xff]   ;;  %1315 = vmatpush1.bf16.msra.mxu1 %v2573_v18  ;;  %v2582_v24 = vld [vmem:[#allocation7 + $0x34] ss:$20 sps:$4 sm:$0xff]   ;;  %v2585_v26 = vld [vmem:[#allocation7 + $0x50] ss:$20 sps:$4 sm:$0xff]  }
  0x76   : > { %v2577_v21 = vld [vmem:[#allocation7 + $0x2c] ss:$20 sps:$4 sm:$0xff]   ;;  %v2583_v25 = vld [vmem:[#allocation7 + $0x54] ss:$20 sps:$4 sm:$0xff]   ;;  %v2580_v27 = vld [vmem:[#allocation7 + $0x30] ss:$20 sps:$4 sm:$0xff]  }
  0x77   : > { %555 = vmatpush1.bf16.msra.mxu0 %v2539_v6  ;;  %1316 = vmatprep.subr.bf16.mxu1 %v2577_v21  ;;  %v2589_v28 = vld [vmem:[#allocation7 + $0x7c] ss:$20 sps:$4 sm:$0xff]   ;;  %v2556_v30 = vld [vmem:[%s3100_s8 + $0x8] sm:$0xff]   ;;  %v2594_v33 = vld [vmem:[#allocation7 + $0x84] ss:$20 sps:$4 sm:$0xff]   ;;  %s3404_s19 = scalar_lea.vmem [#allocation8], %s2193_s18 }
  0x78   : > { %556 = vmatprep.subr.bf16.mxu0 %v2540_v7  ;;  %v2588_v29 = vld [vmem:[#allocation7 + $0x5c] ss:$20 sps:$4 sm:$0xff]   ;;  %v2586_v32 = vld [vmem:[#allocation7 + $0x58] ss:$20 sps:$4 sm:$0xff]   ;;  %v2597_v35 = vld [vmem:[#allocation7 + $0xa0] ss:$20 sps:$4 sm:$0xff]  }
  0x79   : > { %1317 = vmatpush1.bf16.msra.mxu1 %v2579_v22  ;;  %v2595_v34 = vld [vmem:[#allocation7 + $0xa4] ss:$20 sps:$4 sm:$0xff]   ;;  %v2592_v36 = vld [vmem:[#allocation7 + $0x80] ss:$20 sps:$4 sm:$0xff]   ;;  %v2603_v40 = vld [vmem:[#allocation7 + $0xc8] ss:$20 sps:$4 sm:$0xff]  }
  0x7a   : > { %1318 = vmatprep.subr.bf16.mxu1 %v2583_v25  ;;  %v2601_v37 = vld [vmem:[#allocation7 + $0xcc] ss:$20 sps:$4 sm:$0xff]   ;;  %v2598_v41 = vld [vmem:[#allocation7 + $0xa8] ss:$20 sps:$4 sm:$0xff]   ;;  %v2609_v44 = vld [vmem:[#allocation7 + $0xf0] ss:$20 sps:$4 sm:$0xff]  }
  0x7b   : > { %557 = vmatpush1.bf16.msra.mxu0 %v2542_v8  ;;  %v2600_v38 = vld [vmem:[#allocation7 + $0xac] ss:$20 sps:$4 sm:$0xff]   ;;  %v2606_v42 = vld [vmem:[#allocation7 + $0xd4] ss:$20 sps:$4 sm:$0xff]   ;;  %v2604_v45 = vld [vmem:[#allocation7 + $0xd0] ss:$20 sps:$4 sm:$0xff]  }
  0x7c   : > { %558 = vmatprep.subr.bf16.mxu0 %v2543_v9  ;;  %v2607_v43 = vld [vmem:[#allocation7 + $0xf4] ss:$20 sps:$4 sm:$0xff]   ;;  %v2613_v46 = vld [vmem:[#allocation7 + $0x11c] ss:$20 sps:$4 sm:$0xff]   ;;  %v2615_v49 = vld [vmem:[#allocation7 + $0x118] ss:$20 sps:$4 sm:$0xff]  }
  0x7d   : > { %1319 = vmatpush1.bf16.msra.mxu1 %v2585_v26  ;;  %v2612_v47 = vld [vmem:[#allocation7 + $0xfc] ss:$20 sps:$4 sm:$0xff]   ;;  %v2610_v50 = vld [vmem:[#allocation7 + $0xf8] ss:$20 sps:$4 sm:$0xff]   ;;  %v2621_v53 = vld [vmem:[#allocation7 + $0x140] ss:$20 sps:$4 sm:$0xff]  }
  0x7e   : > { %1320 = vmatprep.subr.bf16.mxu1 %v2589_v28  ;;  %v2558_v48 = vld [vmem:[%s3100_s8 + $0x18] sm:$0xff]   ;;  %v2616_v54 = vld [vmem:[#allocation7 + $0x120] ss:$20 sps:$4 sm:$0xff]   ;;  %v2633_v62 = vld [vmem:[#allocation7 + $0x190] ss:$20 sps:$4 sm:$0xff]   ;;  %s2318_s15 = sshll.u32 %s2945_s25, 14 }
  0x7f   : > { %559 = vmatpush1.bf16.msra.mxu0 %v2545_v10  ;;  %v2618_v51 = vld [vmem:[#allocation7 + $0x124] ss:$20 sps:$4 sm:$0xff]   ;;  %v2625_v55 = vld [vmem:[#allocation7 + $0x16c] ss:$20 sps:$4 sm:$0xff]   ;;  %v2622_v58 = vld [vmem:[#allocation7 + $0x148] ss:$20 sps:$4 sm:$0xff]   ;;  %s3660_s9 = scalar_lea.hbm %s3823_s5, %s2318_s15 }
  0x80   : > { %560 = vmatprep.subr.bf16.mxu0 %v2546_v11  ;;  %v2619_v52 = vld [vmem:[#allocation7 + $0x144] ss:$20 sps:$4 sm:$0xff]   ;;  %v2624_v56 = vld [vmem:[#allocation7 + $0x14c] ss:$20 sps:$4 sm:$0xff]   ;;  %v2627_v59 = vld [vmem:[#allocation7 + $0x168] ss:$20 sps:$4 sm:$0xff]  }
  0x81   : > { %1321 = vmatpush1.bf16.msra.mxu1 %v2591_v31  ;;  %v2559_v57 = vld [vmem:[%s3100_s8 + $0x20] sm:$0xff]   ;;  %v2630_v60 = vld [vmem:[#allocation7 + $0x174] ss:$20 sps:$4 sm:$0xff]   ;;  %v2637_v1 = vld [vmem:[#allocation7 + $0x1bc] ss:$20 sps:$4 sm:$0xff]   ;;  %s2041_s7 = sshll.u32 %s3404_s19, 4  ;;  %s3662_s7 = int_to_ptr.vmem [resolvable:$true] %s2041_s7 }
  0x82   : > { %1322 = vmatprep.subr.bf16.mxu1 %v2595_v34  ;;  %v2631_v61 = vld [vmem:[#allocation7 + $0x194] ss:$20 sps:$4 sm:$0xff]   ;;  %v2628_v63 = vld [vmem:[#allocation7 + $0x170] ss:$20 sps:$4 sm:$0xff]   ;;  %v2639_v4 = vld [vmem:[#allocation7 + $0x1b8] ss:$20 sps:$4 sm:$0xff]  }
  0x83   : > { %561 = vmatpush1.bf16.msra.mxu0 %v2548_v12  ;;  %v2636_v2 = vld [vmem:[#allocation7 + $0x19c] ss:$20 sps:$4 sm:$0xff]   ;;  %v2560_v3 = vld [vmem:[%s3100_s8 + $0x28] sm:$0xff]   ;;  %v2642_v6 = vld [vmem:[#allocation7 + $0x1c4] ss:$20 sps:$4 sm:$0xff]   ;;  %s2022_s10 = scalar_lea.sflag [#allocation4], %s3096_s13 }
  0x84   : > { %562 = vmatprep.subr.bf16.mxu0 %v2549_v13  ;;  %v2634_v5 = vld [vmem:[#allocation7 + $0x198] ss:$20 sps:$4 sm:$0xff]   ;;  %v2645_v8 = vld [vmem:[#allocation7 + $0x1e0] ss:$20 sps:$4 sm:$0xff]   ;;  %v2651_v13 = vld [vmem:[#allocation7 + $0x208] ss:$20 sps:$4 sm:$0xff]  }
  0x85   : > { %1323 = vmatpush1.bf16.msra.mxu1 %v2597_v35  ;;  %v2643_v7 = vld [vmem:[#allocation7 + $0x1e4] ss:$20 sps:$4 sm:$0xff]   ;;  %v2640_v9 = vld [vmem:[#allocation7 + $0x1c0] ss:$20 sps:$4 sm:$0xff]   ;;  %v2660_v22 = vld [vmem:[#allocation7 + $0x23c] ss:$20 sps:$4 sm:$0xff]   ;;  %v364_v35 = vlaneseq }
  0x86   : > { %1324 = vmatprep.subr.bf16.mxu1 %v2601_v37  ;;  %v2649_v10 = vld [vmem:[#allocation7 + $0x20c] ss:$20 sps:$4 sm:$0xff]   ;;  %v2561_v12 = vld [vmem:[%s3100_s8 + $0x30] sm:$0xff]   ;;  %v2562_v17 = vld [vmem:[%s3100_s8 + $0x38] sm:$0xff]   ;;  %s2769_s14 = scalar_lea.vmem %s3662_s7, 16384  ;;  %p3838_p0 = scmp.ne.s32.totalorder %s3833_s12, 0 }
  0x87   : > { %563 = vmatpush1.bf16.msra.mxu0 %v2551_v14  ;;  %v2648_v11 = vld [vmem:[#allocation7 + $0x1ec] ss:$20 sps:$4 sm:$0xff]   ;;  %v2646_v14 = vld [vmem:[#allocation7 + $0x1e8] ss:$20 sps:$4 sm:$0xff]   ;;  %v2667_v31 = vld [vmem:[#allocation7 + $0x150] ss:$20 sps:$4 sm:$0xff]   ;;  %p2770_p11 = scmp.ne.s32.totalorder %s3662_s7, %s2769_s14 }
  0x88   : > { %564 = vmatprep.subr.bf16.mxu0 %v2552_v15  ;;  %v2654_v15 = vld [vmem:[#allocation7 + $0x214] ss:$20 sps:$4 sm:$0xff]   ;;  %v2563_v18 = vld [vmem:[%s3100_s8 + $0x40] sm:$0xff]   ;;  %v2566_v25 = vld [vmem:[%s3100_s8 + $0x58] sm:$0xff]  }
  0x89   : > { %1325 = vmatpush1.bf16.msra.mxu1 %v2603_v40  ;;  %v2655_v21 = vld [vmem:[#allocation7 + $0x234] ss:$20 sps:$4 sm:$0xff]   ;;  %v2661_v26 = vld [vmem:[#allocation7 + $0x25c] ss:$20 sps:$4 sm:$0xff]   ;;  %v2663_v28 = vld [vmem:[#allocation7 + $0x258] ss:$20 sps:$4 sm:$0xff]   ;;  %p2771_p1 = pnand %p2770_p11, %p3838_p0 }
  0x8a   : > { %1326 = vmatprep.subr.bf16.mxu1 %v2607_v43  ;;  %v2570_v34 = vld [vmem:[%s3100_s8 + $0x78] sm:$0xff]  }
  0x8b   : > { %565 = vmatpush1.bf16.msra.mxu0 %v2554_v16  ;;  %v2652_v16 = vld [vmem:[#allocation7 + $0x210] ss:$20 sps:$4 sm:$0xff]   ;;  %p2772_p3 = pneg %p2771_p1 }
  0x8c   : > { %1507 = vmatprep.subr.bf16.mxu0 %v2576_v20  ;;  %v2565_v20 = vld [vmem:[%s3100_s8 + $0x50] sm:$0xff]  }
  0x8d   : > { %1327 = vmatpush1.bf16.msra.mxu1 %v2609_v44 }
  0x8e   : > { %583 = vmatmul.mubr.bf16.vlgmr.msra.gmra.mrb[0].mxu0 %v2555_v19  ;;  %1328 = vmatprep.subr.bf16.mxu1 %v2613_v46  ;;  %v2564_v19 = vld [vmem:[%s3100_s8 + $0x48] sm:$0xff]  }
  0x8f   : > { %592 = vmatprep.mubr.bf16.mxu0 %v2882_v0  ;;  %1508 = vmatpush1.bf16.msra.mxu0 %v2574_v23  ;;  %v2657_v23 = vld [vmem:[#allocation7 + $0x230] ss:$20 sps:$4 sm:$0xff]  }
  0x90   : > { %1509 = vmatprep.subr.bf16.mxu0 %v2582_v24  ;;  %v2658_v24 = vld [vmem:[#allocation7 + $0x238] ss:$20 sps:$4 sm:$0xff]  }
  0x91   : > { %1329 = vmatpush1.bf16.msra.mxu1 %v2615_v49 }
  0x92   : > { %1330 = vmatprep.subr.bf16.mxu1 %v2619_v52  ;;  %v2669_v52 = vld [vmem:[#allocation7 + $0x178] ss:$20 sps:$4 sm:$0xff]  }
  0x93   : > { %1510 = vmatpush1.bf16.msra.mxu0 %v2580_v27  ;;  %v2666_v27 = vld [vmem:[#allocation7 + $0x264] ss:$20 sps:$4 sm:$0xff]  }
  0x94   : > { %1511 = vmatprep.subr.bf16.mxu0 %v2588_v29  ;;  %v2664_v29 = vld [vmem:[#allocation7 + $0x260] ss:$20 sps:$4 sm:$0xff]  }
  0x95   : > { %1331 = vmatpush1.bf16.msra.mxu1 %v2621_v53 }
  0x96   : > { %593 = vmatmul.mubr.bf16.gmra.mrb[4].mxu0 %v2556_v30  ;;  %1332 = vmatprep.subr.bf16.mxu1 %v2625_v55  ;;  %v2567_v30 = vld [vmem:[%s3100_s8 + $0x60] sm:$0xff]  }
  0x97   : > { %602 = vmatprep.mubr.bf16.mxu0 %v2882_v0  ;;  %1512 = vmatpush1.bf16.msra.mxu0 %v2586_v32  ;;  %v2568_v32 = vld [vmem:[%s3100_s8 + $0x68] sm:$0xff]  }
  0x98   : > { %1513 = vmatprep.subr.bf16.mxu0 %v2594_v33  ;;  %v2569_v33 = vld [vmem:[%s3100_s8 + $0x70] sm:$0xff]   ;;  %s2883_s8 = smov [#allocation8]  }
  0x99   : > { %1333 = vmatpush1.bf16.msra.mxu1 %v2627_v59  ;;  %s2773_s27 = sshll.u32 %s2883_s8, 4  ;;  %s2774_s27 = int_to_ptr.vmem [resolvable:$false] %s2773_s27 }
  0x9a   : > { %1334 = vmatprep.subr.bf16.mxu1 %v2631_v61  ;;  %s2775_s29 = scalar_lea.vmem %s2774_s27, 32768  ;;  %p2776_p5 = scmp.lt.s32.totalorder %s3662_s7, %s2774_s27 }
  0x9b   : > { %1514 = vmatpush1.bf16.msra.mxu0 %v2592_v36  ;;  %v3142_v36 = vshrl.u32 %v364_v35, 7  ;;  %v2682_v35 = vld [vmem:[#allocation7 + $0x128] ss:$20 sps:$4 sm:$0xff]   ;;  %p2777_p9 = scmp.lt.s32.totalorder %s2775_s29, %s2769_s14 }
  0x9c   : > { %1515 = vmatprep.subr.bf16.mxu0 %v2600_v38  ;;  %v362_v38 = vld [vmem:[%s3820_s2] sm:$0x3] }
  0x9d   : > { %1335 = vmatpush1.bf16.msra.mxu1 %v2633_v62  ;;  %v366_v37 = vsub.s32 0, %v3142_v36  ;;  %p2778_p12 = por %p2777_p9, %p2776_p5 }
  0x9e   : > { %603 = vmatmul.mubr.bf16.gmra.mrb[8].mxu0 %v2557_v39  ;;  %1336 = vmatprep.subr.bf16.mxu1 %v2637_v1  ;;  %v370_v39 = vsub.s32 1, %v3142_v36 }
  0x9f   : > { %612 = vmatprep.mubr.bf16.mxu0 %v2882_v0  ;;  %1516 = vmatpush1.bf16.msra.mxu0 %v2598_v41  ;;  %v3151_v40 = vrot.slane %v362_v38, %v366_v37  ;;  %p2779_p2 = pnand %p2778_p12, %p2772_p3 }
  0xa0   : > { %1517 = vmatprep.subr.bf16.mxu0 %v2606_v42 }
  0xa1   : > { %1337 = vmatpush1.bf16.msra.mxu1 %v2639_v4 }
  0xa2   : > { %1338 = vmatprep.subr.bf16.mxu1 %v2643_v7  ;;  %v2674_v7 = vld [vmem:[#allocation7 + $0x88] ss:$20 sps:$4 sm:$0xff]  }
  0xa3   : > { %1518 = vmatpush1.bf16.msra.mxu0 %v2604_v45 }
  0xa4   : > { %1519 = vmatprep.subr.bf16.mxu0 %v2612_v47 }
  0xa5   : > { %1339 = vmatpush1.bf16.msra.mxu1 %v2645_v8 }
  0xa6   : > { %613 = vmatmul.mubr.bf16.gmra.mrb[12].mxu0 %v2558_v48  ;;  %1340 = vmatprep.subr.bf16.mxu1 %v2649_v10 }
  0xa7   : > { %622 = vmatprep.mubr.bf16.mxu0 %v2882_v0  ;;  %1520 = vmatpush1.bf16.msra.mxu0 %v2610_v50 }
  0xa8   : > { %1521 = vmatprep.subr.bf16.mxu0 %v2618_v51  ;;  %v2668_v51 = vld [vmem:[#allocation7 + $0x10] ss:$20 sps:$4 sm:$0xff]  }
  0xa9   : > { %1341 = vmatpush1.bf16.msra.mxu1 %v2651_v13 }
  0xaa   : > { %1342 = vmatprep.subr.bf16.mxu1 %v2655_v21  ;;  %v2678_v21 = vld [vmem:[#allocation7 + $0xd8] ss:$20 sps:$4 sm:$0xff]  }
  0xab   : > { %1522 = vmatpush1.bf16.msra.mxu0 %v2616_v54 }
  0xac   : > { %1523 = vmatprep.subr.bf16.mxu0 %v2624_v56  ;;  %v2670_v56 = vld [vmem:[#allocation7 + $0x38] ss:$20 sps:$4 sm:$0xff]  }
  0xad   : > { %1343 = vmatpush1.bf16.msra.mxu1 %v2657_v23 }
  0xae   : > { %623 = vmatmul.mubr.bf16.gmra.mrb[16].mxu0 %v2559_v57  ;;  %1344 = vmatprep.subr.bf16.mxu1 %v2661_v26 }
  0xaf   : > { %632 = vmatprep.mubr.bf16.mxu0 %v2882_v0  ;;  %1524 = vmatpush1.bf16.msra.mxu0 %v2622_v58 }
  0xb0   : > { %1525 = vmatprep.subr.bf16.mxu0 %v2630_v60  ;;  %v2671_v60 = vld [vmem:[#allocation7 + $0x1a0] ss:$20 sps:$4 sm:$0xff]  }
  0xb1   : > { %1345 = vmatpush1.bf16.msra.mxu1 %v2663_v28 }
  0xb2   : > { %2432 = vmatprep.subr.bf16.mxu1 %v2667_v31 }
  0xb3   : > { %1526 = vmatpush1.bf16.msra.mxu0 %v2628_v63 }
  0xb4   : > { %1527 = vmatprep.subr.bf16.mxu0 %v2636_v2  ;;  %v2672_v2 = vld [vmem:[#allocation7 + $0x60] ss:$20 sps:$4 sm:$0xff]  }
  0xb6   : > { %633 = vmatmul.mubr.bf16.gmra.mrb[20].mxu0 %v2560_v3  ;;  %v2673_v3 = vld [vmem:[#allocation7 + $0x1c8] ss:$20 sps:$4 sm:$0xff]  }
  0xb7   : > { %642 = vmatprep.mubr.bf16.mxu0 %v2882_v0  ;;  %1528 = vmatpush1.bf16.msra.mxu0 %v2634_v5 }
  0xb8   : > { %1529 = vmatprep.subr.bf16.mxu0 %v2642_v6 }
  0xbb   : > { %1530 = vmatpush1.bf16.msra.mxu0 %v2640_v9 }
  0xbc   : > { %1531 = vmatprep.subr.bf16.mxu0 %v2648_v11  ;;  %v2675_v11 = vld [vmem:[#allocation7 + $0x1f0] ss:$20 sps:$4 sm:$0xff]  }
  0xbe   : > { %643 = vmatmul.mubr.bf16.gmra.mrb[24].mxu0 %v2561_v12 }
  0xbf   : > { %652 = vmatprep.mubr.bf16.mxu0 %v2882_v0  ;;  %1532 = vmatpush1.bf16.msra.mxu0 %v2646_v14 }
  0xc0   : > { %1533 = vmatprep.subr.bf16.mxu0 %v2654_v15 }
  0xc3   : > { %1534 = vmatpush1.bf16.msra.mxu0 %v2652_v16  ;;  %v2676_v16 = vld [vmem:[#allocation7 + $0xb0] ss:$20 sps:$4 sm:$0xff]  }
  0xc4   : > { %1535 = vmatprep.subr.bf16.mxu0 %v2660_v22 }
  0xc6   : > { %653 = vmatmul.mubr.bf16.gmra.mrb[28].mxu0 %v2562_v17  ;;  %v2677_v17 = vld [vmem:[#allocation7 + $0x218] ss:$20 sps:$4 sm:$0xff]  }
  0xc7   : > { %662 = vmatprep.mubr.bf16.mxu0 %v2882_v0  ;;  %1536 = vmatpush1.bf16.msra.mxu0 %v2658_v24 }
  0xc8   : > { %1537 = vmatprep.subr.bf16.mxu0 %v2666_v27 }
  0xcb   : > { %1538 = vmatpush1.bf16.msra.mxu0 %v2664_v29 }
  0xcc   : > { %2320 = vmatprep.subr.bf16.mxu0 %v2667_v31  ;;  %v2681_v31 = vld [vmem:[#allocation7 + $0x268] ss:$20 sps:$4 sm:$0xff]  }
  0xce   : > { %663 = vmatmul.mubr.bf16.gmra.mrb[32].mxu0 %v2563_v18 }
  0xcf   : > { %672 = vmatprep.mubr.bf16.mxu0 %v2882_v0 }
  0xd6   : > { %673 = vmatmul.mubr.bf16.gmra.mrb[36].mxu0 %v2564_v19 }
  0xd7   : > { %682 = vmatprep.mubr.bf16.mxu0 %v2882_v0 }
  0xde   : > { %683 = vmatmul.mubr.bf16.gmra.mrb[40].mxu0 %v2565_v20 }
  0xdf   : > { %692 = vmatprep.mubr.bf16.mxu0 %v2882_v0 }
  0xe6   : > { %693 = vmatmul.mubr.bf16.gmra.mrb[44].mxu0 %v2566_v25  ;;  %v2679_v25 = vld [vmem:[#allocation7 + $0x240] ss:$20 sps:$4 sm:$0xff]  }
  0xe7   : > { %702 = vmatprep.mubr.bf16.mxu0 %v2882_v0 }
  0xee   : > { %703 = vmatmul.mubr.bf16.gmra.mrb[48].mxu0 %v2567_v30  ;;  %v2680_v30 = vld [vmem:[#allocation7 + $0x100] ss:$20 sps:$4 sm:$0xff]  }
  0xef   : > { %712 = vmatprep.mubr.bf16.mxu0 %v2882_v0 }
  0xf6   : > { %713 = vmatmul.mubr.bf16.gmra.mrb[52].mxu0 %v2568_v32 }
  0xf7   : > { %722 = vmatprep.mubr.bf16.mxu0 %v2882_v0 }
  0xfe   : > { %723 = vmatmul.mubr.bf16.gmra.mrb[56].mxu0 %v2569_v33 }
  0xff   : > { %732 = vmatprep.mubr.bf16.mxu0 %v2882_v0  ;;  %v3155_v0 = vrot.slane %v362_v38, %v370_v39 }
 0x106   : > { %733 = vmatmul.mubr.bf16.gmra.mrb[60].mxu0 %v2570_v34 }
 0x161   : > { %v584_v41 = vpop.f32.mrb[0].mxu0 }
 0x162   : > { %v586_v42 = vpop.f32.mrb[1].mxu0  ;;  %v585_v44 = vadd.f32 %v584_v41, %v3151_v40 }
 0x163   : > { %v588_v43 = vpop.f32.mrb[2].mxu0  ;;  %v587_v47 = vadd.f32 %v586_v42, %v3155_v0 }
 0x164   : > { %v589_v45 = vadd.f32 %v588_v43, %v3151_v40  ;;  %v590_v46 = vpop.f32.mrb[3].mxu0 }
 0x165   : > { %v591_v48 = vadd.f32 %v590_v46, %v3155_v0 }
 0x166   : > { %v3161_v49 = vpack.c.bf16 %v589_v45, %v585_v44 }
 0x167   : > { %v3163_v50 = vpack.c.bf16 %v591_v48, %v587_v47 }
 0x169   : > { %v594_v53 = vpop.f32.mrb[4].mxu0  ;;  %1346 = vmatprep.mubr.bf16.mxu1 %v3163_v50  ;;  %1539 = vmatprep.mubr.bf16.mxu0 %v3163_v50 }
 0x16a   : > { %v596_v54 = vpop.f32.mrb[5].mxu0  ;;  %1347 = vmatmul.mubr.bf16.vlgmr.msra.gmra.mrb[0].mxu1 %v3161_v49  ;;  %1540 = vmatmul.mubr.bf16.vlgmr.msra.gmra.mrb[64].mxu0 %v3161_v49  ;;  %v595_v57 = vadd.f32 %v594_v53, %v3151_v40 }
 0x16b   : > { %2440 = vmatpush3.bf16.msra.mxu1 %v2668_v51  ;;  %v598_v55 = vpop.f32.mrb[6].mxu0  ;;  %2321 = vmatpush3.bf16.msra.mxu0 %v2668_v51  ;;  %v597_v61 = vadd.f32 %v596_v54, %v3155_v0 }
 0x16c   : > { %v599_v58 = vadd.f32 %v598_v55, %v3151_v40  ;;  %v600_v59 = vpop.f32.mrb[7].mxu0  ;;  %2433 = vmatprep.subr.bf16.mxu1 %v2669_v52  ;;  %2322 = vmatprep.subr.bf16.mxu0 %v2669_v52 }
 0x16d   : > { %v601_v62 = vadd.f32 %v600_v59, %v3155_v0 }
 0x16e   : > { %v3173_v63 = vpack.c.bf16 %v599_v58, %v595_v57 }
 0x16f   : > { %v3175_v1 = vpack.c.bf16 %v601_v62, %v597_v61  ;;  %2441 = vmatpush3.bf16.msra.mxu1 %v2670_v56  ;;  %2323 = vmatpush3.bf16.msra.mxu0 %v2670_v56 }
 0x170   : > { %2434 = vmatprep.subr.bf16.mxu1 %v2671_v60  ;;  %2324 = vmatprep.subr.bf16.mxu0 %v2671_v60 }
 0x171   : > { %v604_v4 = vpop.f32.mrb[8].mxu0  ;;  %1356 = vmatprep.mubr.bf16.mxu1 %v3175_v1  ;;  %1549 = vmatprep.mubr.bf16.mxu0 %v3175_v1 }
 0x172   : > { %v606_v5 = vpop.f32.mrb[9].mxu0  ;;  %1357 = vmatmul.mubr.bf16.gmra.mrb[4].mxu1 %v3173_v63  ;;  %1550 = vmatmul.mubr.bf16.gmra.mrb[68].mxu0 %v3173_v63  ;;  %v605_v8 = vadd.f32 %v604_v4, %v3151_v40 }
 0x173   : > { %v608_v6 = vpop.f32.mrb[10].mxu0  ;;  %2442 = vmatpush3.bf16.msra.mxu1 %v2672_v2  ;;  %2325 = vmatpush3.bf16.msra.mxu0 %v2672_v2  ;;  %v607_v12 = vadd.f32 %v606_v5, %v3155_v0 }
 0x174   : > { %v609_v9 = vadd.f32 %v608_v6, %v3151_v40  ;;  %v610_v10 = vpop.f32.mrb[11].mxu0  ;;  %2435 = vmatprep.subr.bf16.mxu1 %v2673_v3  ;;  %2326 = vmatprep.subr.bf16.mxu0 %v2673_v3 }
 0x175   : > { %v611_v13 = vadd.f32 %v610_v10, %v3155_v0 }
 0x176   : > { %v3185_v14 = vpack.c.bf16 %v609_v9, %v605_v8 }
 0x177   : > { %v3187_v15 = vpack.c.bf16 %v611_v13, %v607_v12  ;;  %2443 = vmatpush3.bf16.msra.mxu1 %v2674_v7  ;;  %2327 = vmatpush3.bf16.msra.mxu0 %v2674_v7 }
 0x178   : > { %2436 = vmatprep.subr.bf16.mxu1 %v2675_v11  ;;  %2328 = vmatprep.subr.bf16.mxu0 %v2675_v11 }
 0x179   : > { %v614_v18 = vpop.f32.mrb[12].mxu0  ;;  %1366 = vmatprep.mubr.bf16.mxu1 %v3187_v15  ;;  %1559 = vmatprep.mubr.bf16.mxu0 %v3187_v15 }
 0x17a   : > { %v616_v19 = vpop.f32.mrb[13].mxu0  ;;  %1367 = vmatmul.mubr.bf16.gmra.mrb[8].mxu1 %v3185_v14  ;;  %1560 = vmatmul.mubr.bf16.gmra.mrb[72].mxu0 %v3185_v14  ;;  %v615_v22 = vadd.f32 %v614_v18, %v3151_v40 }
 0x17b   : > { %v618_v20 = vpop.f32.mrb[14].mxu0  ;;  %2444 = vmatpush3.bf16.msra.mxu1 %v2676_v16  ;;  %2329 = vmatpush3.bf16.msra.mxu0 %v2676_v16  ;;  %v617_v26 = vadd.f32 %v616_v19, %v3155_v0 }
 0x17c   : > { %v619_v23 = vadd.f32 %v618_v20, %v3151_v40  ;;  %v620_v24 = vpop.f32.mrb[15].mxu0  ;;  %2437 = vmatprep.subr.bf16.mxu1 %v2677_v17  ;;  %2330 = vmatprep.subr.bf16.mxu0 %v2677_v17 }
 0x17d   : > { %v621_v27 = vadd.f32 %v620_v24, %v3155_v0 }
 0x17e   : > { %v3197_v28 = vpack.c.bf16 %v619_v23, %v615_v22 }
 0x17f   : > { %v3199_v29 = vpack.c.bf16 %v621_v27, %v617_v26  ;;  %2445 = vmatpush3.bf16.msra.mxu1 %v2678_v21  ;;  %2331 = vmatpush3.bf16.msra.mxu0 %v2678_v21 }
 0x180   : > { %2438 = vmatprep.subr.bf16.mxu1 %v2679_v25  ;;  %2332 = vmatprep.subr.bf16.mxu0 %v2679_v25 }
 0x181   : > { %v624_v32 = vpop.f32.mrb[16].mxu0  ;;  %1376 = vmatprep.mubr.bf16.mxu1 %v3199_v29  ;;  %1569 = vmatprep.mubr.bf16.mxu0 %v3199_v29 }
 0x182   : > { %v626_v33 = vpop.f32.mrb[17].mxu0  ;;  %1377 = vmatmul.mubr.bf16.gmra.mrb[12].mxu1 %v3197_v28  ;;  %1570 = vmatmul.mubr.bf16.gmra.mrb[76].mxu0 %v3197_v28  ;;  %v625_v38 = vadd.f32 %v624_v32, %v3151_v40 }
 0x183   : > { %v628_v34 = vpop.f32.mrb[18].mxu0  ;;  %2446 = vmatpush3.bf16.msra.mxu1 %v2680_v30  ;;  %2333 = vmatpush3.bf16.msra.mxu0 %v2680_v30  ;;  %v627_v43 = vadd.f32 %v626_v33, %v3155_v0 }
 0x184   : > { %v629_v41 = vadd.f32 %v628_v34, %v3151_v40  ;;  %v630_v42 = vpop.f32.mrb[19].mxu0  ;;  %2439 = vmatprep.subr.bf16.mxu1 %v2681_v31  ;;  %2334 = vmatprep.subr.bf16.mxu0 %v2681_v31 }
 0x185   : > { %v631_v44 = vadd.f32 %v630_v42, %v3155_v0 }
 0x186   : > { %v3209_v45 = vpack.c.bf16 %v629_v41, %v625_v38 }
 0x187   : > { %v3211_v46 = vpack.c.bf16 %v631_v44, %v627_v43  ;;  %2447 = vmatpush3.bf16.msra.mxu1 %v2682_v35  ;;  %2335 = vmatpush3.bf16.msra.mxu0 %v2682_v35 }
 0x189   : > { %v634_v47 = vpop.f32.mrb[20].mxu0  ;;  %1386 = vmatprep.mubr.bf16.mxu1 %v3211_v46  ;;  %1579 = vmatprep.mubr.bf16.mxu0 %v3211_v46 }
 0x18a   : > { %v636_v48 = vpop.f32.mrb[21].mxu0  ;;  %1387 = vmatmul.mubr.bf16.gmra.mrb[16].mxu1 %v3209_v45  ;;  %1580 = vmatmul.mubr.bf16.gmra.mrb[80].mxu0 %v3209_v45  ;;  %v635_v52 = vadd.f32 %v634_v47, %v3151_v40 }
 0x18b   : > { %v638_v51 = vpop.f32.mrb[22].mxu0  ;;  %v637_v55 = vadd.f32 %v636_v48, %v3155_v0 }
 0x18c   : > { %v639_v53 = vadd.f32 %v638_v51, %v3151_v40  ;;  %v640_v54 = vpop.f32.mrb[23].mxu0 }
 0x18d   : > { %v641_v56 = vadd.f32 %v640_v54, %v3155_v0 }
 0x18e   : > { %v3221_v57 = vpack.c.bf16 %v639_v53, %v635_v52 }
 0x18f   : > { %v3223_v58 = vpack.c.bf16 %v641_v56, %v637_v55 }
 0x191   : > { %v644_v59 = vpop.f32.mrb[24].mxu0  ;;  %1396 = vmatprep.mubr.bf16.mxu1 %v3223_v58  ;;  %1589 = vmatprep.mubr.bf16.mxu0 %v3223_v58 }
 0x192   : > { %v646_v60 = vpop.f32.mrb[25].mxu0  ;;  %1397 = vmatmul.mubr.bf16.gmra.mrb[20].mxu1 %v3221_v57  ;;  %1590 = vmatmul.mubr.bf16.gmra.mrb[84].mxu0 %v3221_v57  ;;  %v645_v62 = vadd.f32 %v644_v59, %v3151_v40 }
 0x193   : > { %v648_v61 = vpop.f32.mrb[26].mxu0  ;;  %v647_v4 = vadd.f32 %v646_v60, %v3155_v0 }
 0x194   : > { %v649_v2 = vadd.f32 %v648_v61, %v3151_v40  ;;  %v650_v3 = vpop.f32.mrb[27].mxu0 }
 0x195   : > { %v651_v5 = vadd.f32 %v650_v3, %v3155_v0 }
 0x196   : > { %v3233_v6 = vpack.c.bf16 %v649_v2, %v645_v62 }
 0x197   : > { %v3235_v7 = vpack.c.bf16 %v651_v5, %v647_v4 }
 0x199   : > { %v654_v8 = vpop.f32.mrb[28].mxu0  ;;  %1406 = vmatprep.mubr.bf16.mxu1 %v3235_v7  ;;  %1599 = vmatprep.mubr.bf16.mxu0 %v3235_v7 }
 0x19a   : > { %v656_v9 = vpop.f32.mrb[29].mxu0  ;;  %1407 = vmatmul.mubr.bf16.gmra.mrb[24].mxu1 %v3233_v6  ;;  %1600 = vmatmul.mubr.bf16.gmra.mrb[88].mxu0 %v3233_v6  ;;  %v655_v11 = vadd.f32 %v654_v8, %v3151_v40 }
 0x19b   : > { %v658_v10 = vpop.f32.mrb[30].mxu0  ;;  %v657_v16 = vadd.f32 %v656_v9, %v3155_v0 }
 0x19c   : > { %v659_v12 = vadd.f32 %v658_v10, %v3151_v40  ;;  %v660_v13 = vpop.f32.mrb[31].mxu0 }
 0x19d   : > { %v661_v17 = vadd.f32 %v660_v13, %v3155_v0 }
 0x19e   : > { %v3245_v18 = vpack.c.bf16 %v659_v12, %v655_v11 }
 0x19f   : > { %v3247_v19 = vpack.c.bf16 %v661_v17, %v657_v16 }
 0x1a1   : > { %v664_v20 = vpop.f32.mrb[32].mxu0  ;;  %1416 = vmatprep.mubr.bf16.mxu1 %v3247_v19  ;;  %1609 = vmatprep.mubr.bf16.mxu0 %v3247_v19 }
 0x1a2   : > { %v666_v21 = vpop.f32.mrb[33].mxu0  ;;  %1417 = vmatmul.mubr.bf16.gmra.mrb[28].mxu1 %v3245_v18  ;;  %1610 = vmatmul.mubr.bf16.gmra.mrb[92].mxu0 %v3245_v18  ;;  %v665_v23 = vadd.f32 %v664_v20, %v3151_v40 }
 0x1a3   : > { %v668_v22 = vpop.f32.mrb[34].mxu0  ;;  %v667_v26 = vadd.f32 %v666_v21, %v3155_v0 }
 0x1a4   : > { %v669_v24 = vadd.f32 %v668_v22, %v3151_v40  ;;  %v670_v25 = vpop.f32.mrb[35].mxu0 }
 0x1a5   : > { %v671_v27 = vadd.f32 %v670_v25, %v3155_v0 }
 0x1a6   : > { %v3257_v30 = vpack.c.bf16 %v669_v24, %v665_v23 }
 0x1a7   : > { %v3259_v31 = vpack.c.bf16 %v671_v27, %v667_v26 }
 0x1a9   : > { %v674_v32 = vpop.f32.mrb[36].mxu0  ;;  %1426 = vmatprep.mubr.bf16.mxu1 %v3259_v31  ;;  %1619 = vmatprep.mubr.bf16.mxu0 %v3259_v31 }
 0x1aa   : > { %v676_v33 = vpop.f32.mrb[37].mxu0  ;;  %1427 = vmatmul.mubr.bf16.gmra.mrb[32].mxu1 %v3257_v30  ;;  %1620 = vmatmul.mubr.bf16.gmra.mrb[96].mxu0 %v3257_v30  ;;  %v675_v35 = vadd.f32 %v674_v32, %v3151_v40 }
 0x1ab   : > { %v678_v34 = vpop.f32.mrb[38].mxu0  ;;  %v677_v42 = vadd.f32 %v676_v33, %v3155_v0 }
 0x1ac   : > { %v679_v38 = vadd.f32 %v678_v34, %v3151_v40  ;;  %v680_v41 = vpop.f32.mrb[39].mxu0 }
 0x1ad   : > { %v681_v43 = vadd.f32 %v680_v41, %v3155_v0 }
 0x1ae   : > { %v3269_v44 = vpack.c.bf16 %v679_v38, %v675_v35 }
 0x1af   : > { %v3271_v47 = vpack.c.bf16 %v681_v43, %v677_v42 }
 0x1b1   : > { %v684_v48 = vpop.f32.mrb[40].mxu0  ;;  %1436 = vmatprep.mubr.bf16.mxu1 %v3271_v47  ;;  %1629 = vmatprep.mubr.bf16.mxu0 %v3271_v47 }
 0x1b2   : > { %v686_v51 = vpop.f32.mrb[41].mxu0  ;;  %1437 = vmatmul.mubr.bf16.gmra.mrb[36].mxu1 %v3269_v44  ;;  %1630 = vmatmul.mubr.bf16.gmra.mrb[100].mxu0 %v3269_v44  ;;  %v685_v53 = vadd.f32 %v684_v48, %v3151_v40 }
 0x1b3   : > { %v688_v52 = vpop.f32.mrb[42].mxu0  ;;  %v687_v56 = vadd.f32 %v686_v51, %v3155_v0 }
 0x1b4   : > { %v689_v54 = vadd.f32 %v688_v52, %v3151_v40  ;;  %v690_v55 = vpop.f32.mrb[43].mxu0 }
 0x1b5   : > { %v691_v59 = vadd.f32 %v690_v55, %v3155_v0 }
 0x1b6   : > { %v3281_v60 = vpack.c.bf16 %v689_v54, %v685_v53 }
 0x1b7   : > { %v3283_v61 = vpack.c.bf16 %v691_v59, %v687_v56 }
 0x1b9   : > { %v694_v62 = vpop.f32.mrb[44].mxu0  ;;  %1446 = vmatprep.mubr.bf16.mxu1 %v3283_v61  ;;  %1639 = vmatprep.mubr.bf16.mxu0 %v3283_v61 }
 0x1ba   : > { %v696_v2 = vpop.f32.mrb[45].mxu0  ;;  %1447 = vmatmul.mubr.bf16.gmra.mrb[40].mxu1 %v3281_v60  ;;  %1640 = vmatmul.mubr.bf16.gmra.mrb[104].mxu0 %v3281_v60  ;;  %v695_v4 = vadd.f32 %v694_v62, %v3151_v40 }
 0x1bb   : > { %v698_v3 = vpop.f32.mrb[46].mxu0  ;;  %v697_v9 = vadd.f32 %v696_v2, %v3155_v0 }
 0x1bc   : > { %v699_v5 = vadd.f32 %v698_v3, %v3151_v40  ;;  %v700_v8 = vpop.f32.mrb[47].mxu0 }
 0x1bd   : > { %v701_v10 = vadd.f32 %v700_v8, %v3155_v0 }
 0x1be   : > { %v3293_v11 = vpack.c.bf16 %v699_v5, %v695_v4 }
 0x1bf   : > { %v3295_v12 = vpack.c.bf16 %v701_v10, %v697_v9 }
 0x1c1   : > { %v704_v13 = vpop.f32.mrb[48].mxu0  ;;  %1456 = vmatprep.mubr.bf16.mxu1 %v3295_v12  ;;  %1649 = vmatprep.mubr.bf16.mxu0 %v3295_v12 }
 0x1c2   : > { %v706_v16 = vpop.f32.mrb[49].mxu0  ;;  %1457 = vmatmul.mubr.bf16.gmra.mrb[44].mxu1 %v3293_v11  ;;  %1650 = vmatmul.mubr.bf16.gmra.mrb[108].mxu0 %v3293_v11  ;;  %v705_v20 = vadd.f32 %v704_v13, %v3151_v40 }
 0x1c3   : > { %v708_v17 = vpop.f32.mrb[50].mxu0  ;;  %v707_v23 = vadd.f32 %v706_v16, %v3155_v0 }
 0x1c4   : > { %v709_v21 = vadd.f32 %v708_v17, %v3151_v40  ;;  %v710_v22 = vpop.f32.mrb[51].mxu0 }
 0x1c5   : > { %v711_v24 = vadd.f32 %v710_v22, %v3155_v0 }
 0x1c6   : > { %v3305_v25 = vpack.c.bf16 %v709_v21, %v705_v20 }
 0x1c7   : > { %v3307_v26 = vpack.c.bf16 %v711_v24, %v707_v23 }
 0x1c9   : > { %v714_v27 = vpop.f32.mrb[52].mxu0  ;;  %1466 = vmatprep.mubr.bf16.mxu1 %v3307_v26  ;;  %1659 = vmatprep.mubr.bf16.mxu0 %v3307_v26 }
 0x1ca   : > { %v716_v32 = vpop.f32.mrb[53].mxu0  ;;  %1467 = vmatmul.mubr.bf16.gmra.mrb[48].mxu1 %v3305_v25  ;;  %1660 = vmatmul.mubr.bf16.gmra.mrb[112].mxu0 %v3305_v25  ;;  %v715_v34 = vadd.f32 %v714_v27, %v3151_v40 }
 0x1cb   : > { %v718_v33 = vpop.f32.mrb[54].mxu0  ;;  %v717_v41 = vadd.f32 %v716_v32, %v3155_v0 }
 0x1cc   : > { %v719_v35 = vadd.f32 %v718_v33, %v3151_v40  ;;  %v720_v38 = vpop.f32.mrb[55].mxu0 }
 0x1cd   : > { %v721_v42 = vadd.f32 %v720_v38, %v3155_v0 }
 0x1ce   : > { %v3317_v43 = vpack.c.bf16 %v719_v35, %v715_v34 }
 0x1cf   : > { %v3319_v48 = vpack.c.bf16 %v721_v42, %v717_v41 }
 0x1d1   : > { %v724_v51 = vpop.f32.mrb[56].mxu0  ;;  %1476 = vmatprep.mubr.bf16.mxu1 %v3319_v48  ;;  %1669 = vmatprep.mubr.bf16.mxu0 %v3319_v48 }
 0x1d2   : > { %v726_v52 = vpop.f32.mrb[57].mxu0  ;;  %1477 = vmatmul.mubr.bf16.gmra.mrb[52].mxu1 %v3317_v43  ;;  %1670 = vmatmul.mubr.bf16.gmra.mrb[116].mxu0 %v3317_v43  ;;  %v725_v54 = vadd.f32 %v724_v51, %v3151_v40 }
 0x1d3   : > { %v728_v53 = vpop.f32.mrb[58].mxu0  ;;  %v727_v59 = vadd.f32 %v726_v52, %v3155_v0 }
 0x1d4   : > { %v729_v55 = vadd.f32 %v728_v53, %v3151_v40  ;;  %v730_v56 = vpop.f32.mrb[59].mxu0 }
 0x1d5   : > { %v731_v62 = vadd.f32 %v730_v56, %v3155_v0 }
 0x1d6   : > { %v3329_v2 = vpack.c.bf16 %v729_v55, %v725_v54 }
 0x1d7   : > { %v3331_v3 = vpack.c.bf16 %v731_v62, %v727_v59 }
 0x1d9   : > { %v734_v4 = vpop.f32.mrb[60].mxu0  ;;  %1486 = vmatprep.mubr.bf16.mxu1 %v3331_v3  ;;  %1679 = vmatprep.mubr.bf16.mxu0 %v3331_v3 }
 0x1da   : > { %v736_v5 = vpop.f32.mrb[61].mxu0  ;;  %1487 = vmatmul.mubr.bf16.gmra.mrb[56].mxu1 %v3329_v2  ;;  %1680 = vmatmul.mubr.bf16.gmra.mrb[120].mxu0 %v3329_v2  ;;  %v735_v9 = vadd.f32 %v734_v4, %v3151_v40 }
 0x1db   : > { %v738_v8 = vpop.f32.mrb[62].mxu0  ;;  %v737_v16 = vadd.f32 %v736_v5, %v3155_v0 }
 0x1dc   : > { %v739_v10 = vadd.f32 %v738_v8, %v3151_v40  ;;  %v740_v13 = vpop.f32.mrb[63].mxu0  ;;  %v883_v40 = vsub.s32 2, %v3142_v36 }
 0x1dd   : > { %v741_v17 = vadd.f32 %v740_v13, %v3155_v0  ;;  %v887_v0 = vsub.s32 3, %v3142_v36 }
 0x1de   : > { %v3341_v20 = vpack.c.bf16 %v739_v10, %v735_v9 }
 0x1df   : > { %v3343_v21 = vpack.c.bf16 %v741_v17, %v737_v16 }
 0x1e1   : > { %1496 = vmatprep.mubr.bf16.mxu1 %v3343_v21  ;;  %1689 = vmatprep.mubr.bf16.mxu0 %v3343_v21 }
 0x1e2   : > { %1497 = vmatmul.mubr.bf16.gmra.mrb[60].mxu1 %v3341_v20  ;;  %1690 = vmatmul.mubr.bf16.gmra.mrb[124].mxu0 %v3341_v20 }
 0x1e3   : > { %1732 = vmatprep.mubr.bf16.mxu0 %v3163_v50  ;;  %1748 = vmatprep.mubr.bf16.mxu1 %v3187_v15 }
 0x1ea   : > { %1733 = vmatmul.mubr.bf16.vlgmr.msra.gmra.mrb[128].mxu0 %v3161_v49  ;;  %1749 = vmatmul.mubr.bf16.vlgmr.msra.gmra.mrb[64].mxu1 %v3185_v14  ;;  %v3379_v49 = vld [vmem:[%s3822_s4] sm:$0x1f] }
 0x1eb   : > { %1740 = vmatprep.mubr.bf16.mxu0 %v3175_v1  ;;  %1756 = vmatprep.mubr.bf16.mxu1 %v3199_v29  ;;  %v3386_v50 = vrot.slane %v3379_v49, %v366_v37  ;;  %v3395_v1 = vrot.slane %v3379_v49, %v370_v39  ;;  %v3398_v14 = vrot.slane %v3379_v49, %v887_v0 }
 0x1f2   : > { %1741 = vmatmul.mubr.bf16.gmra.mrb[132].mxu0 %v3173_v63  ;;  %1757 = vmatmul.mubr.bf16.gmra.mrb[68].mxu1 %v3197_v28  ;;  %v3389_v63 = vrot.slane %v3379_v49, %v883_v40 }
 0x1f3   : > { %1764 = vmatprep.mubr.bf16.mxu1 %v3211_v46 }
 0x1fa   : > { %1765 = vmatmul.mubr.bf16.gmra.mrb[72].mxu1 %v3209_v45 }
 0x1fb   : > { %1772 = vmatprep.mubr.bf16.mxu1 %v3223_v58 }
 0x202   : > { %1773 = vmatmul.mubr.bf16.gmra.mrb[76].mxu1 %v3221_v57 }
 0x203   : > { %1780 = vmatprep.mubr.bf16.mxu1 %v3235_v7 }
 0x20a   : > { %1781 = vmatmul.mubr.bf16.gmra.mrb[80].mxu1 %v3233_v6 }
 0x20b   : > { %1788 = vmatprep.mubr.bf16.mxu1 %v3247_v19 }
 0x212   : > { %1789 = vmatmul.mubr.bf16.gmra.mrb[84].mxu1 %v3245_v18 }
 0x213   : > { %1796 = vmatprep.mubr.bf16.mxu1 %v3259_v31 }
 0x21a   : > { %1797 = vmatmul.mubr.bf16.gmra.mrb[88].mxu1 %v3257_v30 }
 0x21b   : > { %1804 = vmatprep.mubr.bf16.mxu1 %v3271_v47 }
 0x222   : > { %1805 = vmatmul.mubr.bf16.gmra.mrb[92].mxu1 %v3269_v44 }
 0x223   : > { %1812 = vmatprep.mubr.bf16.mxu1 %v3283_v61 }
 0x22a   : > { %1813 = vmatmul.mubr.bf16.gmra.mrb[96].mxu1 %v3281_v60 }
 0x22b   : > { %1820 = vmatprep.mubr.bf16.mxu1 %v3295_v12 }
 0x232   : > { %1821 = vmatmul.mubr.bf16.gmra.mrb[100].mxu1 %v3293_v11 }
 0x233   : > { %1828 = vmatprep.mubr.bf16.mxu1 %v3307_v26 }
 0x23a   : > { %1829 = vmatmul.mubr.bf16.gmra.mrb[104].mxu1 %v3305_v25 }
 0x23b   : > { %1836 = vmatprep.mubr.bf16.mxu1 %v3319_v48 }
 0x23d   : > { %v1348_v15 = vpop.f32.mrb[0].mxu1  ;;  %v1541_v28 = vpop.f32.mrb[64].mxu0 }
 0x23e   : > { %v1349_v29 = vadd.f32 %v1348_v15, %v3386_v50  ;;  %v1542_v37 = vadd.f32 %v1541_v28, %v3389_v63  ;;  %v1350_v45 = vpop.f32.mrb[1].mxu1  ;;  %v1543_v46 = vpop.f32.mrb[65].mxu0 }
 0x23f   : > { %v1351_v57 = vadd.f32 %v1350_v45, %v3395_v1  ;;  %v1544_v58 = vadd.f32 %v1543_v46, %v3398_v14  ;;  %v1352_v6 = vpop.f32.mrb[2].mxu1  ;;  %v1545_v7 = vpop.f32.mrb[66].mxu0 }
 0x240   : > { %1861 = vst [vmem:[%s3404_s19] sm:$0xff] %v1349_v29  ;;  %1863 = vst [vmem:[%s3404_s19 + $0x10] sm:$0xff] %v1542_v37  ;;  %v1353_v39 = vadd.f32 %v1352_v6, %v3386_v50  ;;  %v1546_v18 = vadd.f32 %v1545_v7, %v3389_v63  ;;  %v1354_v19 = vpop.f32.mrb[3].mxu1  ;;  %v1547_v30 = vpop.f32.mrb[67].mxu0 }
 0x241   : > { %1862 = vst [vmem:[%s3404_s19 + $0x8] sm:$0xff] %v1351_v57  ;;  %1864 = vst [vmem:[%s3404_s19 + $0x18] sm:$0xff] %v1544_v58  ;;  %v1355_v31 = vadd.f32 %v1354_v19, %v3395_v1  ;;  %v1548_v44 = vadd.f32 %v1547_v30, %v3398_v14 }
 0x242   : > { %1865 = vst [vmem:[%s3404_s19 + $0x20] sm:$0xff] %v1353_v39  ;;  %1867 = vst [vmem:[%s3404_s19 + $0x30] sm:$0xff] %v1546_v18  ;;  %1837 = vmatmul.mubr.bf16.gmra.mrb[108].mxu1 %v3317_v43 }
 0x243   : > { %1866 = vst [vmem:[%s3404_s19 + $0x28] sm:$0xff] %v1355_v31  ;;  %1868 = vst [vmem:[%s3404_s19 + $0x38] sm:$0xff] %v1548_v44  ;;  %1844 = vmatprep.mubr.bf16.mxu1 %v3331_v3 }
 0x245   : > { %v1358_v47 = vpop.f32.mrb[4].mxu1  ;;  %v1551_v60 = vpop.f32.mrb[68].mxu0 }
 0x246   : > { %v1359_v61 = vadd.f32 %v1358_v47, %v3386_v50  ;;  %v1552_v11 = vadd.f32 %v1551_v60, %v3389_v63  ;;  %v1360_v12 = vpop.f32.mrb[5].mxu1  ;;  %v1553_v22 = vpop.f32.mrb[69].mxu0 }
 0x247   : > { %v1361_v23 = vadd.f32 %v1360_v12, %v3395_v1  ;;  %v1554_v24 = vadd.f32 %v1553_v22, %v3398_v14  ;;  %v1362_v25 = vpop.f32.mrb[6].mxu1  ;;  %v1555_v26 = vpop.f32.mrb[70].mxu0 }
 0x248   : > { %1869 = vst [vmem:[%s3404_s19 + $0x40] sm:$0xff] %v1359_v61  ;;  %1871 = vst [vmem:[%s3404_s19 + $0x50] sm:$0xff] %v1552_v11  ;;  %v1363_v27 = vadd.f32 %v1362_v25, %v3386_v50  ;;  %v1556_v32 = vadd.f32 %v1555_v26, %v3389_v63  ;;  %v1364_v33 = vpop.f32.mrb[7].mxu1  ;;  %v1557_v34 = vpop.f32.mrb[71].mxu0 }
 0x249   : > { %1870 = vst [vmem:[%s3404_s19 + $0x48] sm:$0xff] %v1361_v23  ;;  %1872 = vst [vmem:[%s3404_s19 + $0x58] sm:$0xff] %v1554_v24  ;;  %v1365_v35 = vadd.f32 %v1364_v33, %v3395_v1  ;;  %v1558_v38 = vadd.f32 %v1557_v34, %v3398_v14 }
 0x24a   : > { %1873 = vst [vmem:[%s3404_s19 + $0x60] sm:$0xff] %v1363_v27  ;;  %1875 = vst [vmem:[%s3404_s19 + $0x70] sm:$0xff] %v1556_v32  ;;  %1845 = vmatmul.mubr.bf16.gmra.mrb[112].mxu1 %v3329_v2 }
 0x24b   : > { %1874 = vst [vmem:[%s3404_s19 + $0x68] sm:$0xff] %v1365_v35  ;;  %1876 = vst [vmem:[%s3404_s19 + $0x78] sm:$0xff] %v1558_v38  ;;  %1852 = vmatprep.mubr.bf16.mxu1 %v3343_v21 }
 0x24d   : > { %v1368_v41 = vpop.f32.mrb[8].mxu1  ;;  %v1561_v42 = vpop.f32.mrb[72].mxu0 }
 0x24e   : > { %v1369_v43 = vadd.f32 %v1368_v41, %v3386_v50  ;;  %v1562_v48 = vadd.f32 %v1561_v42, %v3389_v63  ;;  %v1370_v51 = vpop.f32.mrb[9].mxu1  ;;  %v1563_v52 = vpop.f32.mrb[73].mxu0 }
 0x24f   : > { %v1371_v53 = vadd.f32 %v1370_v51, %v3395_v1  ;;  %v1564_v54 = vadd.f32 %v1563_v52, %v3398_v14  ;;  %v1372_v55 = vpop.f32.mrb[10].mxu1  ;;  %v1565_v56 = vpop.f32.mrb[74].mxu0 }
 0x250   : > { %1877 = vst [vmem:[%s3404_s19 + $0x80] sm:$0xff] %v1369_v43  ;;  %1879 = vst [vmem:[%s3404_s19 + $0x90] sm:$0xff] %v1562_v48  ;;  %v1373_v59 = vadd.f32 %v1372_v55, %v3386_v50  ;;  %v1566_v62 = vadd.f32 %v1565_v56, %v3389_v63  ;;  %v1374_v2 = vpop.f32.mrb[11].mxu1  ;;  %v1567_v3 = vpop.f32.mrb[75].mxu0 }
 0x251   : > { %1878 = vst [vmem:[%s3404_s19 + $0x88] sm:$0xff] %v1371_v53  ;;  %1880 = vst [vmem:[%s3404_s19 + $0x98] sm:$0xff] %v1564_v54  ;;  %v1375_v4 = vadd.f32 %v1374_v2, %v3395_v1  ;;  %v1568_v5 = vadd.f32 %v1567_v3, %v3398_v14 }
 0x252   : > { %1881 = vst [vmem:[%s3404_s19 + $0xa0] sm:$0xff] %v1373_v59  ;;  %1883 = vst [vmem:[%s3404_s19 + $0xb0] sm:$0xff] %v1566_v62  ;;  %1853 = vmatmul.mubr.bf16.gmra.mrb[116].mxu1 %v3341_v20 }
 0x253   : > { %1882 = vst [vmem:[%s3404_s19 + $0xa8] sm:$0xff] %v1375_v4  ;;  %1884 = vst [vmem:[%s3404_s19 + $0xb8] sm:$0xff] %v1568_v5 }
 0x255   : > { %v1378_v8 = vpop.f32.mrb[12].mxu1  ;;  %v1571_v9 = vpop.f32.mrb[76].mxu0 }
 0x256   : > { %v1379_v10 = vadd.f32 %v1378_v8, %v3386_v50  ;;  %v1572_v13 = vadd.f32 %v1571_v9, %v3389_v63  ;;  %v1380_v16 = vpop.f32.mrb[13].mxu1  ;;  %v1573_v17 = vpop.f32.mrb[77].mxu0 }
 0x257   : > { %v1381_v21 = vadd.f32 %v1380_v16, %v3395_v1  ;;  %v1574_v40 = vadd.f32 %v1573_v17, %v3398_v14  ;;  %v1382_v20 = vpop.f32.mrb[14].mxu1  ;;  %v1575_v0 = vpop.f32.mrb[78].mxu0 }
 0x258   : > { %1885 = vst [vmem:[%s3404_s19 + $0xc0] sm:$0xff] %v1379_v10  ;;  %1887 = vst [vmem:[%s3404_s19 + $0xd0] sm:$0xff] %v1572_v13  ;;  %v1383_v15 = vadd.f32 %v1382_v20, %v3386_v50  ;;  %v1576_v28 = vadd.f32 %v1575_v0, %v3389_v63  ;;  %v1384_v29 = vpop.f32.mrb[15].mxu1  ;;  %v1577_v37 = vpop.f32.mrb[79].mxu0 }
 0x259   : > { %1886 = vst [vmem:[%s3404_s19 + $0xc8] sm:$0xff] %v1381_v21  ;;  %1888 = vst [vmem:[%s3404_s19 + $0xd8] sm:$0xff] %v1574_v40  ;;  %v1385_v45 = vadd.f32 %v1384_v29, %v3395_v1  ;;  %v1578_v46 = vadd.f32 %v1577_v37, %v3398_v14 }
 0x25a   : > { %1889 = vst [vmem:[%s3404_s19 + $0xe0] sm:$0xff] %v1383_v15  ;;  %1891 = vst [vmem:[%s3404_s19 + $0xf0] sm:$0xff] %v1576_v28 }
 0x25b   : > { %1890 = vst [vmem:[%s3404_s19 + $0xe8] sm:$0xff] %v1385_v45  ;;  %1892 = vst [vmem:[%s3404_s19 + $0xf8] sm:$0xff] %v1578_v46 }
 0x25d   : > { %v1388_v57 = vpop.f32.mrb[16].mxu1  ;;  %v1581_v58 = vpop.f32.mrb[80].mxu0 }
 0x25e   : > { %v1389_v6 = vadd.f32 %v1388_v57, %v3386_v50  ;;  %v1582_v7 = vadd.f32 %v1581_v58, %v3389_v63  ;;  %v1390_v39 = vpop.f32.mrb[17].mxu1  ;;  %v1583_v18 = vpop.f32.mrb[81].mxu0 }
 0x25f   : > { %v1391_v19 = vadd.f32 %v1390_v39, %v3395_v1  ;;  %v1584_v30 = vadd.f32 %v1583_v18, %v3398_v14  ;;  %v1392_v31 = vpop.f32.mrb[18].mxu1  ;;  %v1585_v44 = vpop.f32.mrb[82].mxu0 }
 0x260   : > { %1893 = vst [vmem:[%s3404_s19 + $0x100] sm:$0xff] %v1389_v6  ;;  %1895 = vst [vmem:[%s3404_s19 + $0x110] sm:$0xff] %v1582_v7  ;;  %v1393_v47 = vadd.f32 %v1392_v31, %v3386_v50  ;;  %v1586_v60 = vadd.f32 %v1585_v44, %v3389_v63  ;;  %v1394_v61 = vpop.f32.mrb[19].mxu1  ;;  %v1587_v11 = vpop.f32.mrb[83].mxu0 }
 0x261   : > { %1894 = vst [vmem:[%s3404_s19 + $0x108] sm:$0xff] %v1391_v19  ;;  %1896 = vst [vmem:[%s3404_s19 + $0x118] sm:$0xff] %v1584_v30  ;;  %v1395_v12 = vadd.f32 %v1394_v61, %v3395_v1  ;;  %v1588_v22 = vadd.f32 %v1587_v11, %v3398_v14 }
 0x262   : > { %1897 = vst [vmem:[%s3404_s19 + $0x120] sm:$0xff] %v1393_v47  ;;  %1899 = vst [vmem:[%s3404_s19 + $0x130] sm:$0xff] %v1586_v60 }
 0x263   : > { %1898 = vst [vmem:[%s3404_s19 + $0x128] sm:$0xff] %v1395_v12  ;;  %1900 = vst [vmem:[%s3404_s19 + $0x138] sm:$0xff] %v1588_v22 }
 0x265   : > { %v1398_v23 = vpop.f32.mrb[20].mxu1  ;;  %v1591_v24 = vpop.f32.mrb[84].mxu0 }
 0x266   : > { %v1399_v25 = vadd.f32 %v1398_v23, %v3386_v50  ;;  %v1592_v26 = vadd.f32 %v1591_v24, %v3389_v63  ;;  %v1400_v27 = vpop.f32.mrb[21].mxu1  ;;  %v1593_v32 = vpop.f32.mrb[85].mxu0 }
 0x267   : > { %v1401_v33 = vadd.f32 %v1400_v27, %v3395_v1  ;;  %v1594_v34 = vadd.f32 %v1593_v32, %v3398_v14  ;;  %v1402_v35 = vpop.f32.mrb[22].mxu1  ;;  %v1595_v38 = vpop.f32.mrb[86].mxu0 }
 0x268   : > { %1901 = vst [vmem:[%s3404_s19 + $0x140] sm:$0xff] %v1399_v25  ;;  %1903 = vst [vmem:[%s3404_s19 + $0x150] sm:$0xff] %v1592_v26  ;;  %v1403_v41 = vadd.f32 %v1402_v35, %v3386_v50  ;;  %v1596_v42 = vadd.f32 %v1595_v38, %v3389_v63  ;;  %v1404_v43 = vpop.f32.mrb[23].mxu1  ;;  %v1597_v48 = vpop.f32.mrb[87].mxu0 }
 0x269   : > { %1902 = vst [vmem:[%s3404_s19 + $0x148] sm:$0xff] %v1401_v33  ;;  %1904 = vst [vmem:[%s3404_s19 + $0x158] sm:$0xff] %v1594_v34  ;;  %v1405_v51 = vadd.f32 %v1404_v43, %v3395_v1  ;;  %v1598_v52 = vadd.f32 %v1597_v48, %v3398_v14 }
 0x26a   : > { %1905 = vst [vmem:[%s3404_s19 + $0x160] sm:$0xff] %v1403_v41  ;;  %1907 = vst [vmem:[%s3404_s19 + $0x170] sm:$0xff] %v1596_v42 }
 0x26b   : > { %1906 = vst [vmem:[%s3404_s19 + $0x168] sm:$0xff] %v1405_v51  ;;  %1908 = vst [vmem:[%s3404_s19 + $0x178] sm:$0xff] %v1598_v52 }
 0x26d   : > { %v1408_v53 = vpop.f32.mrb[24].mxu1  ;;  %v1601_v54 = vpop.f32.mrb[88].mxu0 }
 0x26e   : > { %v1409_v55 = vadd.f32 %v1408_v53, %v3386_v50  ;;  %v1602_v56 = vadd.f32 %v1601_v54, %v3389_v63  ;;  %v1410_v59 = vpop.f32.mrb[25].mxu1  ;;  %v1603_v62 = vpop.f32.mrb[89].mxu0 }
 0x26f   : > { %v1411_v2 = vadd.f32 %v1410_v59, %v3395_v1  ;;  %v1604_v3 = vadd.f32 %v1603_v62, %v3398_v14  ;;  %v1412_v4 = vpop.f32.mrb[26].mxu1  ;;  %v1605_v5 = vpop.f32.mrb[90].mxu0 }
 0x270   : > { %1909 = vst [vmem:[%s3404_s19 + $0x180] sm:$0xff] %v1409_v55  ;;  %1911 = vst [vmem:[%s3404_s19 + $0x190] sm:$0xff] %v1602_v56  ;;  %v1413_v8 = vadd.f32 %v1412_v4, %v3386_v50  ;;  %v1606_v9 = vadd.f32 %v1605_v5, %v3389_v63  ;;  %v1414_v10 = vpop.f32.mrb[27].mxu1  ;;  %v1607_v13 = vpop.f32.mrb[91].mxu0 }
 0x271   : > { %1910 = vst [vmem:[%s3404_s19 + $0x188] sm:$0xff] %v1411_v2  ;;  %1912 = vst [vmem:[%s3404_s19 + $0x198] sm:$0xff] %v1604_v3  ;;  %v1415_v16 = vadd.f32 %v1414_v10, %v3395_v1  ;;  %v1608_v17 = vadd.f32 %v1607_v13, %v3398_v14 }
 0x272   : > { %1913 = vst [vmem:[%s3404_s19 + $0x1a0] sm:$0xff] %v1413_v8  ;;  %1915 = vst [vmem:[%s3404_s19 + $0x1b0] sm:$0xff] %v1606_v9 }
 0x273   : > { %1914 = vst [vmem:[%s3404_s19 + $0x1a8] sm:$0xff] %v1415_v16  ;;  %1916 = vst [vmem:[%s3404_s19 + $0x1b8] sm:$0xff] %v1608_v17 }
 0x275   : > { %v1418_v21 = vpop.f32.mrb[28].mxu1  ;;  %v1611_v40 = vpop.f32.mrb[92].mxu0 }
 0x276   : > { %v1419_v20 = vadd.f32 %v1418_v21, %v3386_v50  ;;  %v1612_v0 = vadd.f32 %v1611_v40, %v3389_v63  ;;  %v1420_v15 = vpop.f32.mrb[29].mxu1  ;;  %v1613_v28 = vpop.f32.mrb[93].mxu0 }
 0x277   : > { %v1421_v29 = vadd.f32 %v1420_v15, %v3395_v1  ;;  %v1614_v37 = vadd.f32 %v1613_v28, %v3398_v14  ;;  %v1422_v45 = vpop.f32.mrb[30].mxu1  ;;  %v1615_v46 = vpop.f32.mrb[94].mxu0 }
 0x278   : > { %1917 = vst [vmem:[%s3404_s19 + $0x1c0] sm:$0xff] %v1419_v20  ;;  %1919 = vst [vmem:[%s3404_s19 + $0x1d0] sm:$0xff] %v1612_v0  ;;  %v1423_v57 = vadd.f32 %v1422_v45, %v3386_v50  ;;  %v1616_v58 = vadd.f32 %v1615_v46, %v3389_v63  ;;  %v1424_v6 = vpop.f32.mrb[31].mxu1  ;;  %v1617_v7 = vpop.f32.mrb[95].mxu0 }
 0x279   : > { %1918 = vst [vmem:[%s3404_s19 + $0x1c8] sm:$0xff] %v1421_v29  ;;  %1920 = vst [vmem:[%s3404_s19 + $0x1d8] sm:$0xff] %v1614_v37  ;;  %v1425_v39 = vadd.f32 %v1424_v6, %v3395_v1  ;;  %v1618_v18 = vadd.f32 %v1617_v7, %v3398_v14 }
 0x27a   : > { %1921 = vst [vmem:[%s3404_s19 + $0x1e0] sm:$0xff] %v1423_v57  ;;  %1923 = vst [vmem:[%s3404_s19 + $0x1f0] sm:$0xff] %v1616_v58 }
 0x27b   : > { %1922 = vst [vmem:[%s3404_s19 + $0x1e8] sm:$0xff] %v1425_v39  ;;  %1924 = vst [vmem:[%s3404_s19 + $0x1f8] sm:$0xff] %v1618_v18 }
 0x27d   : > { %v1428_v19 = vpop.f32.mrb[32].mxu1  ;;  %v1621_v30 = vpop.f32.mrb[96].mxu0 }
 0x27e   : > { %v1429_v31 = vadd.f32 %v1428_v19, %v3386_v50  ;;  %v1622_v44 = vadd.f32 %v1621_v30, %v3389_v63  ;;  %v1430_v47 = vpop.f32.mrb[33].mxu1  ;;  %v1623_v60 = vpop.f32.mrb[97].mxu0 }
 0x27f   : > { %v1431_v61 = vadd.f32 %v1430_v47, %v3395_v1  ;;  %v1624_v11 = vadd.f32 %v1623_v60, %v3398_v14  ;;  %v1432_v12 = vpop.f32.mrb[34].mxu1  ;;  %v1625_v22 = vpop.f32.mrb[98].mxu0 }
 0x280   : > { %1925 = vst [vmem:[%s3404_s19 + $0x200] sm:$0xff] %v1429_v31  ;;  %1927 = vst [vmem:[%s3404_s19 + $0x210] sm:$0xff] %v1622_v44  ;;  %v1433_v23 = vadd.f32 %v1432_v12, %v3386_v50  ;;  %v1626_v24 = vadd.f32 %v1625_v22, %v3389_v63  ;;  %v1434_v25 = vpop.f32.mrb[35].mxu1  ;;  %v1627_v26 = vpop.f32.mrb[99].mxu0 }
 0x281   : > { %1926 = vst [vmem:[%s3404_s19 + $0x208] sm:$0xff] %v1431_v61  ;;  %1928 = vst [vmem:[%s3404_s19 + $0x218] sm:$0xff] %v1624_v11  ;;  %v1435_v27 = vadd.f32 %v1434_v25, %v3395_v1  ;;  %v1628_v32 = vadd.f32 %v1627_v26, %v3398_v14 }
 0x282   : > { %1929 = vst [vmem:[%s3404_s19 + $0x220] sm:$0xff] %v1433_v23  ;;  %1931 = vst [vmem:[%s3404_s19 + $0x230] sm:$0xff] %v1626_v24 }
 0x283   : > { %1930 = vst [vmem:[%s3404_s19 + $0x228] sm:$0xff] %v1435_v27  ;;  %1932 = vst [vmem:[%s3404_s19 + $0x238] sm:$0xff] %v1628_v32 }
 0x285   : > { %v1438_v33 = vpop.f32.mrb[36].mxu1  ;;  %v1631_v34 = vpop.f32.mrb[100].mxu0 }
 0x286   : > { %v1439_v35 = vadd.f32 %v1438_v33, %v3386_v50  ;;  %v1632_v38 = vadd.f32 %v1631_v34, %v3389_v63  ;;  %v1440_v41 = vpop.f32.mrb[37].mxu1  ;;  %v1633_v42 = vpop.f32.mrb[101].mxu0 }
 0x287   : > { %v1441_v43 = vadd.f32 %v1440_v41, %v3395_v1  ;;  %v1634_v48 = vadd.f32 %v1633_v42, %v3398_v14  ;;  %v1442_v51 = vpop.f32.mrb[38].mxu1  ;;  %v1635_v52 = vpop.f32.mrb[102].mxu0 }
 0x288   : > { %1933 = vst [vmem:[%s3404_s19 + $0x240] sm:$0xff] %v1439_v35  ;;  %1935 = vst [vmem:[%s3404_s19 + $0x250] sm:$0xff] %v1632_v38  ;;  %v1443_v53 = vadd.f32 %v1442_v51, %v3386_v50  ;;  %v1636_v54 = vadd.f32 %v1635_v52, %v3389_v63  ;;  %v1444_v55 = vpop.f32.mrb[39].mxu1  ;;  %v1637_v56 = vpop.f32.mrb[103].mxu0 }
 0x289   : > { %1934 = vst [vmem:[%s3404_s19 + $0x248] sm:$0xff] %v1441_v43  ;;  %1936 = vst [vmem:[%s3404_s19 + $0x258] sm:$0xff] %v1634_v48  ;;  %v1445_v59 = vadd.f32 %v1444_v55, %v3395_v1  ;;  %v1638_v62 = vadd.f32 %v1637_v56, %v3398_v14 }
 0x28a   : > { %1937 = vst [vmem:[%s3404_s19 + $0x260] sm:$0xff] %v1443_v53  ;;  %1939 = vst [vmem:[%s3404_s19 + $0x270] sm:$0xff] %v1636_v54 }
 0x28b   : > { %1938 = vst [vmem:[%s3404_s19 + $0x268] sm:$0xff] %v1445_v59  ;;  %1940 = vst [vmem:[%s3404_s19 + $0x278] sm:$0xff] %v1638_v62 }
 0x28d   : > { %v1448_v2 = vpop.f32.mrb[40].mxu1  ;;  %v1641_v3 = vpop.f32.mrb[104].mxu0 }
 0x28e   : > { %v1449_v4 = vadd.f32 %v1448_v2, %v3386_v50  ;;  %v1642_v5 = vadd.f32 %v1641_v3, %v3389_v63  ;;  %v1450_v8 = vpop.f32.mrb[41].mxu1  ;;  %v1643_v9 = vpop.f32.mrb[105].mxu0 }
 0x28f   : > { %v1451_v10 = vadd.f32 %v1450_v8, %v3395_v1  ;;  %v1644_v13 = vadd.f32 %v1643_v9, %v3398_v14  ;;  %v1452_v16 = vpop.f32.mrb[42].mxu1  ;;  %v1645_v17 = vpop.f32.mrb[106].mxu0 }
 0x290   : > { %1941 = vst [vmem:[%s3404_s19 + $0x280] sm:$0xff] %v1449_v4  ;;  %1943 = vst [vmem:[%s3404_s19 + $0x290] sm:$0xff] %v1642_v5  ;;  %v1453_v21 = vadd.f32 %v1452_v16, %v3386_v50  ;;  %v1646_v40 = vadd.f32 %v1645_v17, %v3389_v63  ;;  %v1454_v20 = vpop.f32.mrb[43].mxu1  ;;  %v1647_v0 = vpop.f32.mrb[107].mxu0 }
 0x291   : > { %1942 = vst [vmem:[%s3404_s19 + $0x288] sm:$0xff] %v1451_v10  ;;  %1944 = vst [vmem:[%s3404_s19 + $0x298] sm:$0xff] %v1644_v13  ;;  %v1455_v15 = vadd.f32 %v1454_v20, %v3395_v1  ;;  %v1648_v28 = vadd.f32 %v1647_v0, %v3398_v14 }
 0x292   : > { %1945 = vst [vmem:[%s3404_s19 + $0x2a0] sm:$0xff] %v1453_v21  ;;  %1947 = vst [vmem:[%s3404_s19 + $0x2b0] sm:$0xff] %v1646_v40 }
 0x293   : > { %1946 = vst [vmem:[%s3404_s19 + $0x2a8] sm:$0xff] %v1455_v15  ;;  %1948 = vst [vmem:[%s3404_s19 + $0x2b8] sm:$0xff] %v1648_v28 }
 0x295   : > { %v1458_v29 = vpop.f32.mrb[44].mxu1  ;;  %v1651_v37 = vpop.f32.mrb[108].mxu0 }
 0x296   : > { %v1459_v45 = vadd.f32 %v1458_v29, %v3386_v50  ;;  %v1652_v46 = vadd.f32 %v1651_v37, %v3389_v63  ;;  %v1460_v57 = vpop.f32.mrb[45].mxu1  ;;  %v1653_v58 = vpop.f32.mrb[109].mxu0 }
 0x297   : > { %v1461_v6 = vadd.f32 %v1460_v57, %v3395_v1  ;;  %v1654_v7 = vadd.f32 %v1653_v58, %v3398_v14  ;;  %v1462_v39 = vpop.f32.mrb[46].mxu1  ;;  %v1655_v18 = vpop.f32.mrb[110].mxu0 }
 0x298   : > { %1949 = vst [vmem:[%s3404_s19 + $0x2c0] sm:$0xff] %v1459_v45  ;;  %1951 = vst [vmem:[%s3404_s19 + $0x2d0] sm:$0xff] %v1652_v46  ;;  %v1463_v19 = vadd.f32 %v1462_v39, %v3386_v50  ;;  %v1656_v30 = vadd.f32 %v1655_v18, %v3389_v63  ;;  %v1464_v31 = vpop.f32.mrb[47].mxu1  ;;  %v1657_v44 = vpop.f32.mrb[111].mxu0 }
 0x299   : > { %1950 = vst [vmem:[%s3404_s19 + $0x2c8] sm:$0xff] %v1461_v6  ;;  %1952 = vst [vmem:[%s3404_s19 + $0x2d8] sm:$0xff] %v1654_v7  ;;  %v1465_v47 = vadd.f32 %v1464_v31, %v3395_v1  ;;  %v1658_v60 = vadd.f32 %v1657_v44, %v3398_v14 }
 0x29a   : > { %1953 = vst [vmem:[%s3404_s19 + $0x2e0] sm:$0xff] %v1463_v19  ;;  %1955 = vst [vmem:[%s3404_s19 + $0x2f0] sm:$0xff] %v1656_v30 }
 0x29b   : > { %1954 = vst [vmem:[%s3404_s19 + $0x2e8] sm:$0xff] %v1465_v47  ;;  %1956 = vst [vmem:[%s3404_s19 + $0x2f8] sm:$0xff] %v1658_v60 }
 0x29d   : > { %v1468_v61 = vpop.f32.mrb[48].mxu1  ;;  %v1661_v11 = vpop.f32.mrb[112].mxu0 }
 0x29e   : > { %v1469_v12 = vadd.f32 %v1468_v61, %v3386_v50  ;;  %v1662_v22 = vadd.f32 %v1661_v11, %v3389_v63  ;;  %v1470_v23 = vpop.f32.mrb[49].mxu1  ;;  %v1663_v24 = vpop.f32.mrb[113].mxu0 }
 0x29f   : > { %v1471_v25 = vadd.f32 %v1470_v23, %v3395_v1  ;;  %v1664_v26 = vadd.f32 %v1663_v24, %v3398_v14  ;;  %v1472_v27 = vpop.f32.mrb[50].mxu1  ;;  %v1665_v32 = vpop.f32.mrb[114].mxu0  ;;  %v891_v23 = vsub.s32 4, %v3142_v36 }
 0x2a0   : > { %1957 = vst [vmem:[%s3404_s19 + $0x300] sm:$0xff] %v1469_v12  ;;  %1959 = vst [vmem:[%s3404_s19 + $0x310] sm:$0xff] %v1662_v22  ;;  %v1473_v33 = vadd.f32 %v1472_v27, %v3386_v50  ;;  %v1666_v34 = vadd.f32 %v1665_v32, %v3389_v63  ;;  %v1474_v35 = vpop.f32.mrb[51].mxu1  ;;  %v1667_v38 = vpop.f32.mrb[115].mxu0 }
 0x2a1   : > { %1958 = vst [vmem:[%s3404_s19 + $0x308] sm:$0xff] %v1471_v25  ;;  %1960 = vst [vmem:[%s3404_s19 + $0x318] sm:$0xff] %v1664_v26  ;;  %v1475_v41 = vadd.f32 %v1474_v35, %v3395_v1  ;;  %v1668_v42 = vadd.f32 %v1667_v38, %v3398_v14 }
 0x2a2   : > { %1961 = vst [vmem:[%s3404_s19 + $0x320] sm:$0xff] %v1473_v33  ;;  %1963 = vst [vmem:[%s3404_s19 + $0x330] sm:$0xff] %v1666_v34 }
 0x2a3   : > { %1962 = vst [vmem:[%s3404_s19 + $0x328] sm:$0xff] %v1475_v41  ;;  %1964 = vst [vmem:[%s3404_s19 + $0x338] sm:$0xff] %v1668_v42 }
 0x2a5   : > { %v1478_v43 = vpop.f32.mrb[52].mxu1  ;;  %v1671_v48 = vpop.f32.mrb[116].mxu0 }
 0x2a6   : > { %v1479_v51 = vadd.f32 %v1478_v43, %v3386_v50  ;;  %v1672_v52 = vadd.f32 %v1671_v48, %v3389_v63  ;;  %v1480_v53 = vpop.f32.mrb[53].mxu1  ;;  %v1673_v54 = vpop.f32.mrb[117].mxu0 }
 0x2a7   : > { %v1481_v55 = vadd.f32 %v1480_v53, %v3395_v1  ;;  %v1674_v56 = vadd.f32 %v1673_v54, %v3398_v14  ;;  %v1482_v59 = vpop.f32.mrb[54].mxu1  ;;  %v1675_v62 = vpop.f32.mrb[118].mxu0 }
 0x2a8   : > { %1965 = vst [vmem:[%s3404_s19 + $0x340] sm:$0xff] %v1479_v51  ;;  %1967 = vst [vmem:[%s3404_s19 + $0x350] sm:$0xff] %v1672_v52  ;;  %v1483_v2 = vadd.f32 %v1482_v59, %v3386_v50  ;;  %v1676_v3 = vadd.f32 %v1675_v62, %v3389_v63  ;;  %v1484_v4 = vpop.f32.mrb[55].mxu1  ;;  %v1677_v5 = vpop.f32.mrb[119].mxu0 }
 0x2a9   : > { %1966 = vst [vmem:[%s3404_s19 + $0x348] sm:$0xff] %v1481_v55  ;;  %1968 = vst [vmem:[%s3404_s19 + $0x358] sm:$0xff] %v1674_v56  ;;  %v1485_v8 = vadd.f32 %v1484_v4, %v3395_v1  ;;  %v1678_v9 = vadd.f32 %v1677_v5, %v3398_v14 }
 0x2aa   : > { %1969 = vst [vmem:[%s3404_s19 + $0x360] sm:$0xff] %v1483_v2  ;;  %1971 = vst [vmem:[%s3404_s19 + $0x370] sm:$0xff] %v1676_v3 }
 0x2ab   : > { %1970 = vst [vmem:[%s3404_s19 + $0x368] sm:$0xff] %v1485_v8  ;;  %1972 = vst [vmem:[%s3404_s19 + $0x378] sm:$0xff] %v1678_v9 }
 0x2ad   : > { %v1488_v10 = vpop.f32.mrb[56].mxu1  ;;  %v1681_v13 = vpop.f32.mrb[120].mxu0 }
 0x2ae   : > { %v1489_v16 = vadd.f32 %v1488_v10, %v3386_v50  ;;  %v1682_v17 = vadd.f32 %v1681_v13, %v3389_v63  ;;  %v1490_v21 = vpop.f32.mrb[57].mxu1  ;;  %v1683_v40 = vpop.f32.mrb[121].mxu0 }
 0x2af   : > { %v1491_v20 = vadd.f32 %v1490_v21, %v3395_v1  ;;  %v1684_v0 = vadd.f32 %v1683_v40, %v3398_v14  ;;  %v1492_v15 = vpop.f32.mrb[58].mxu1  ;;  %v1685_v28 = vpop.f32.mrb[122].mxu0 }
 0x2b0   : > { %1973 = vst [vmem:[%s3404_s19 + $0x380] sm:$0xff] %v1489_v16  ;;  %1975 = vst [vmem:[%s3404_s19 + $0x390] sm:$0xff] %v1682_v17  ;;  %v1493_v29 = vadd.f32 %v1492_v15, %v3386_v50  ;;  %v1686_v37 = vadd.f32 %v1685_v28, %v3389_v63  ;;  %v1494_v45 = vpop.f32.mrb[59].mxu1  ;;  %v1687_v46 = vpop.f32.mrb[123].mxu0 }
 0x2b1   : > { %1974 = vst [vmem:[%s3404_s19 + $0x388] sm:$0xff] %v1491_v20  ;;  %1976 = vst [vmem:[%s3404_s19 + $0x398] sm:$0xff] %v1684_v0  ;;  %v1495_v57 = vadd.f32 %v1494_v45, %v3395_v1  ;;  %v1688_v58 = vadd.f32 %v1687_v46, %v3398_v14 }
 0x2b2   : > { %1977 = vst [vmem:[%s3404_s19 + $0x3a0] sm:$0xff] %v1493_v29  ;;  %1979 = vst [vmem:[%s3404_s19 + $0x3b0] sm:$0xff] %v1686_v37 }
 0x2b3   : > { %1978 = vst [vmem:[%s3404_s19 + $0x3a8] sm:$0xff] %v1495_v57  ;;  %1980 = vst [vmem:[%s3404_s19 + $0x3b8] sm:$0xff] %v1688_v58 }
 0x2b5   : > { %v1498_v6 = vpop.f32.mrb[60].mxu1  ;;  %v1691_v7 = vpop.f32.mrb[124].mxu0 }
 0x2b6   : > { %v1499_v39 = vadd.f32 %v1498_v6, %v3386_v50  ;;  %v1692_v18 = vadd.f32 %v1691_v7, %v3389_v63  ;;  %v1500_v19 = vpop.f32.mrb[61].mxu1  ;;  %v1693_v30 = vpop.f32.mrb[125].mxu0 }
 0x2b7   : > { %v1501_v31 = vadd.f32 %v1500_v19, %v3395_v1  ;;  %v1694_v44 = vadd.f32 %v1693_v30, %v3398_v14  ;;  %v1502_v47 = vpop.f32.mrb[62].mxu1  ;;  %v1695_v60 = vpop.f32.mrb[126].mxu0 }
 0x2b8   : > { %1981 = vst [vmem:[%s3404_s19 + $0x3c0] sm:$0xff] %v1499_v39  ;;  %1983 = vst [vmem:[%s3404_s19 + $0x3d0] sm:$0xff] %v1692_v18  ;;  %v1503_v61 = vadd.f32 %v1502_v47, %v3386_v50  ;;  %v1696_v11 = vadd.f32 %v1695_v60, %v3389_v63  ;;  %v1504_v12 = vpop.f32.mrb[63].mxu1  ;;  %v1697_v22 = vpop.f32.mrb[127].mxu0 }
 0x2b9   : > { %1982 = vst [vmem:[%s3404_s19 + $0x3c8] sm:$0xff] %v1501_v31  ;;  %1984 = vst [vmem:[%s3404_s19 + $0x3d8] sm:$0xff] %v1694_v44  ;;  %v1505_v50 = vadd.f32 %v1504_v12, %v3395_v1  ;;  %v1698_v63 = vadd.f32 %v1697_v22, %v3398_v14 }
 0x2ba   : > { %1985 = vst [vmem:[%s3404_s19 + $0x3e0] sm:$0xff] %v1503_v61  ;;  %1987 = vst [vmem:[%s3404_s19 + $0x3f0] sm:$0xff] %v1696_v11 }
 0x2bb   : > { %1986 = vst [vmem:[%s3404_s19 + $0x3e8] sm:$0xff] %v1505_v50  ;;  %1988 = vst [vmem:[%s3404_s19 + $0x3f8] sm:$0xff] %v1698_v63 }
 0x2bc   : > { %2782 = shalt.err (!%p2779_p2)
}
 0x2bd   : > { %s2783_s16 = scalar_lea.hbm %s3660_s9, 16384  ;;  %s2787_s19 = scalar_lea.hbm %s3823_s5, 32768 }
 0x2be   : > { %p2784_p13 = scmp.ne.s32.totalorder %s3660_s9, %s2783_s16  ;;  %p2788_p4 = scmp.lt.u32.totalorder %s3660_s9, %s3823_s5 }
 0x2bf   : > { %p2789_p7 = scmp.lt.u32.totalorder %s2787_s19, %s2783_s16  ;;  %p2791_p11 = scmp.lt.u32.totalorder %s2783_s16, %s3660_s9 }
 0x2c0   : > { %p2785_p6 = pnand %p2784_p13, %p3838_p0 }
 0x2c1   : > { %p2790_p8 = por %p2789_p7, %p2788_p4 }
 0x2c2   : > { %p2786_p10 = pneg %p2785_p6 }
 0x2c3   : > { %p2792_p1 = por %p2791_p11, %p2790_p8 }
 0x2c5   : > { %p2793_p3 = pnand %p2792_p1, %p2786_p10 }
 0x2c7   : > { %2796 = shalt.err (!%p2793_p3)
}
 0x2c8   : > { %s2884_s20 = smov 512   ;;  %s2885_s14 = smov 32   ;;  %v2336_v36 = vpop.f32.mrb[128].mxu0  ;;  %v2348_v1 = vpop.f32.mrb[64].mxu1  ;;  %v3699_v14 = vrot.slane %v3379_v49, %v891_v23 }
 0x2c9   : > { %2458 = dma.vmem_to_hbm [thread:$0]  (%p3838_p0), %s3662_s7, 16384, %s3660_s9, %s2022_s10, %s2884_s20, %s2884_s20, %s2885_s14   ;;  %v2337_v24 = vpop.f32.mrb[129].mxu0  ;;  %v2349_v25 = vpop.f32.mrb[65].mxu1 }
 0x2ca   : > { %s2194_s8 = sshll.u32 %s3096_s13, 8  ;;  %v2338_v26 = vadd.f32 %v2337_v24, %v2336_v36  ;;  %v2350_v27 = vadd.f32 %v2349_v25, %v2348_v1  ;;  %v2339_v32 = vpop.f32.mrb[130].mxu0  ;;  %v2351_v33 = vpop.f32.mrb[66].mxu1  ;;  %s2319_s9 = sshll.u32 %s2945_s25, 12 }
 0x2cb   : > { %v2340_v34 = vpop.f32.mrb[131].mxu0  ;;  %v2352_v35 = vpop.f32.mrb[67].mxu1  ;;  %s3703_s7 = scalar_lea.vmem [#allocation9], %s2194_s8  ;;  %s3769_s16 = scalar_lea.hbm %s3824_s6, %s2319_s9 }
 0x2cc   : > { %v1735_v38 = vadd.f32 %v2338_v26, %v3699_v14  ;;  %v1751_v41 = vadd.f32 %v2350_v27, %v3699_v14  ;;  %v2341_v42 = vadd.f32 %v2340_v34, %v2339_v32  ;;  %v2353_v43 = vadd.f32 %v2352_v35, %v2351_v33  ;;  %v2342_v51 = vpop.f32.mrb[132].mxu0  ;;  %v2354_v52 = vpop.f32.mrb[68].mxu1  ;;  %s2057_s10 = sshll.u32 %s3703_s7, 4  ;;  %s2027_s25 = scalar_lea.sflag [#allocation10], %s3096_s13  ;;  %s3771_s10 = int_to_ptr.vmem [resolvable:$true] %s2057_s10 }
 0x2cd   : > { %v2343_v53 = vpop.f32.mrb[133].mxu0  ;;  %v2355_v54 = vpop.f32.mrb[69].mxu1  ;;  %s2797_s17 = scalar_lea.vmem %s3771_s10, 4096  ;;  %s2886_s18 = smov [#allocation9]  }
 0x2ce   : > { %1989 = vst [vmem:[%s3703_s7] sm:$0xff] %v1735_v38  ;;  %1993 = vst [vmem:[%s3703_s7 + $0x20] sm:$0xff] %v1751_v41  ;;  %v1738_v49 = vadd.f32 %v2341_v42, %v3699_v14  ;;  %v1754_v48 = vadd.f32 %v2353_v43, %v3699_v14  ;;  %v2344_v55 = vadd.f32 %v2343_v53, %v2342_v51  ;;  %v2345_v59 = vpop.f32.mrb[134].mxu0  ;;  %v2357_v62 = vpop.f32.mrb[70].mxu1  ;;  %p2798_p5 = scmp.ne.s32.totalorder %s3771_s10, %s2797_s17  ;;  %s2801_s19 = sshll.u32 %s2886_s18, 4  ;;  %s2802_s19 = int_to_ptr.vmem [resolvable:$false] %s2801_s19 }
 0x2cf   : > { %v2356_v56 = vadd.f32 %v2355_v54, %v2354_v52  ;;  %v2346_v2 = vpop.f32.mrb[135].mxu0  ;;  %v2358_v3 = vpop.f32.mrb[71].mxu1  ;;  %s2803_s15 = scalar_lea.vmem %s2802_s19, 8192  ;;  %p2804_p2 = scmp.lt.s32.totalorder %s3771_s10, %s2802_s19 }
 0x2d0   : > { %1990 = vst [vmem:[%s3703_s7 + $0x8] sm:$0xff] %v1738_v49  ;;  %1994 = vst [vmem:[%s3703_s7 + $0x28] sm:$0xff] %v1754_v48  ;;  %v1743_v4 = vadd.f32 %v2344_v55, %v3699_v14  ;;  %v2347_v8 = vadd.f32 %v2346_v2, %v2345_v59  ;;  %v2359_v9 = vadd.f32 %v2358_v3, %v2357_v62  ;;  %v2360_v16 = vpop.f32.mrb[72].mxu1  ;;  %p2799_p9 = pnand %p2798_p5, %p3838_p0  ;;  %p2805_p13 = scmp.lt.s32.totalorder %s2803_s15, %s2797_s17 }
 0x2d1   : > { %v1759_v5 = vadd.f32 %v2356_v56, %v3699_v14  ;;  %v2361_v17 = vpop.f32.mrb[73].mxu1 }
 0x2d2   : > { %1991 = vst [vmem:[%s3703_s7 + $0x10] sm:$0xff] %v1743_v4  ;;  %v1746_v10 = vadd.f32 %v2347_v8, %v3699_v14  ;;  %v1762_v13 = vadd.f32 %v2359_v9, %v3699_v14  ;;  %v2362_v21 = vadd.f32 %v2361_v17, %v2360_v16  ;;  %v2363_v40 = vpop.f32.mrb[74].mxu1  ;;  %p2800_p12 = pneg %p2799_p9  ;;  %p2806_p6 = por %p2805_p13, %p2804_p2 }
 0x2d3   : > { %1995 = vst [vmem:[%s3703_s7 + $0x30] sm:$0xff] %v1759_v5  ;;  %v2364_v20 = vpop.f32.mrb[75].mxu1 }
 0x2d4   : > { %1992 = vst [vmem:[%s3703_s7 + $0x18] sm:$0xff] %v1746_v10  ;;  %1996 = vst [vmem:[%s3703_s7 + $0x38] sm:$0xff] %v1762_v13  ;;  %v1767_v0 = vadd.f32 %v2362_v21, %v3699_v14  ;;  %v2365_v15 = vadd.f32 %v2364_v20, %v2363_v40  ;;  %p2807_p10 = pnand %p2806_p6, %p2800_p12 }
 0x2d5   : > { %v2366_v29 = vpop.f32.mrb[76].mxu1 }
 0x2d6   : > { %1997 = vst [vmem:[%s3703_s7 + $0x40] sm:$0xff] %v1767_v0  ;;  %v1770_v28 = vadd.f32 %v2365_v15, %v3699_v14  ;;  %v2367_v37 = vpop.f32.mrb[77].mxu1 }
 0x2d7   : > { %v2368_v45 = vadd.f32 %v2367_v37, %v2366_v29  ;;  %v2369_v46 = vpop.f32.mrb[78].mxu1 }
 0x2d8   : > { %1998 = vst [vmem:[%s3703_s7 + $0x48] sm:$0xff] %v1770_v28  ;;  %v2370_v57 = vpop.f32.mrb[79].mxu1 }
 0x2d9   : > { %v1775_v58 = vadd.f32 %v2368_v45, %v3699_v14  ;;  %v2371_v6 = vadd.f32 %v2370_v57, %v2369_v46 }
 0x2db   : > { %1999 = vst [vmem:[%s3703_s7 + $0x50] sm:$0xff] %v1775_v58  ;;  %v1778_v7 = vadd.f32 %v2371_v6, %v3699_v14 }
 0x2dd   : > { %2000 = vst [vmem:[%s3703_s7 + $0x58] sm:$0xff] %v1778_v7  ;;  %v2372_v39 = vpop.f32.mrb[80].mxu1 }
 0x2de   : > { %v2373_v18 = vpop.f32.mrb[81].mxu1 }
 0x2df   : > { %v2374_v19 = vadd.f32 %v2373_v18, %v2372_v39  ;;  %v2375_v30 = vpop.f32.mrb[82].mxu1 }
 0x2e0   : > { %v2376_v31 = vpop.f32.mrb[83].mxu1 }
 0x2e1   : > { %v1783_v44 = vadd.f32 %v2374_v19, %v3699_v14  ;;  %v2377_v47 = vadd.f32 %v2376_v31, %v2375_v30 }
 0x2e3   : > { %2001 = vst [vmem:[%s3703_s7 + $0x60] sm:$0xff] %v1783_v44  ;;  %v1786_v60 = vadd.f32 %v2377_v47, %v3699_v14 }
 0x2e5   : > { %2002 = vst [vmem:[%s3703_s7 + $0x68] sm:$0xff] %v1786_v60  ;;  %v2378_v61 = vpop.f32.mrb[84].mxu1 }
 0x2e6   : > { %v2379_v11 = vpop.f32.mrb[85].mxu1 }
 0x2e7   : > { %v2380_v12 = vadd.f32 %v2379_v11, %v2378_v61  ;;  %v2381_v22 = vpop.f32.mrb[86].mxu1 }
 0x2e8   : > { %v2382_v23 = vpop.f32.mrb[87].mxu1 }
 0x2e9   : > { %v1791_v50 = vadd.f32 %v2380_v12, %v3699_v14  ;;  %v2383_v63 = vadd.f32 %v2382_v23, %v2381_v22 }
 0x2eb   : > { %2003 = vst [vmem:[%s3703_s7 + $0x70] sm:$0xff] %v1791_v50  ;;  %v1794_v36 = vadd.f32 %v2383_v63, %v3699_v14 }
 0x2ed   : > { %2004 = vst [vmem:[%s3703_s7 + $0x78] sm:$0xff] %v1794_v36  ;;  %v2384_v1 = vpop.f32.mrb[88].mxu1 }
 0x2ee   : > { %v2385_v24 = vpop.f32.mrb[89].mxu1 }
 0x2ef   : > { %v2386_v25 = vadd.f32 %v2385_v24, %v2384_v1  ;;  %v2387_v26 = vpop.f32.mrb[90].mxu1 }
 0x2f0   : > { %v2388_v27 = vpop.f32.mrb[91].mxu1 }
 0x2f1   : > { %v1799_v32 = vadd.f32 %v2386_v25, %v3699_v14  ;;  %v2389_v33 = vadd.f32 %v2388_v27, %v2387_v26 }
 0x2f3   : > { %2005 = vst [vmem:[%s3703_s7 + $0x80] sm:$0xff] %v1799_v32  ;;  %v1802_v34 = vadd.f32 %v2389_v33, %v3699_v14 }
 0x2f5   : > { %2006 = vst [vmem:[%s3703_s7 + $0x88] sm:$0xff] %v1802_v34  ;;  %v2390_v35 = vpop.f32.mrb[92].mxu1 }
 0x2f6   : > { %v2391_v38 = vpop.f32.mrb[93].mxu1 }
 0x2f7   : > { %v2392_v41 = vadd.f32 %v2391_v38, %v2390_v35  ;;  %v2393_v42 = vpop.f32.mrb[94].mxu1 }
 0x2f8   : > { %v2394_v43 = vpop.f32.mrb[95].mxu1 }
 0x2f9   : > { %v1807_v49 = vadd.f32 %v2392_v41, %v3699_v14  ;;  %v2395_v48 = vadd.f32 %v2394_v43, %v2393_v42 }
 0x2fb   : > { %2007 = vst [vmem:[%s3703_s7 + $0x90] sm:$0xff] %v1807_v49  ;;  %v1810_v51 = vadd.f32 %v2395_v48, %v3699_v14 }
 0x2fd   : > { %2008 = vst [vmem:[%s3703_s7 + $0x98] sm:$0xff] %v1810_v51  ;;  %v2396_v52 = vpop.f32.mrb[96].mxu1 }
 0x2fe   : > { %v2397_v53 = vpop.f32.mrb[97].mxu1 }
 0x2ff   : > { %v2398_v54 = vadd.f32 %v2397_v53, %v2396_v52  ;;  %v2399_v55 = vpop.f32.mrb[98].mxu1 }
 0x300   : > { %v2400_v56 = vpop.f32.mrb[99].mxu1 }
 0x301   : > { %v1815_v59 = vadd.f32 %v2398_v54, %v3699_v14  ;;  %v2401_v62 = vadd.f32 %v2400_v56, %v2399_v55 }
 0x303   : > { %2009 = vst [vmem:[%s3703_s7 + $0xa0] sm:$0xff] %v1815_v59  ;;  %v1818_v2 = vadd.f32 %v2401_v62, %v3699_v14 }
 0x305   : > { %2010 = vst [vmem:[%s3703_s7 + $0xa8] sm:$0xff] %v1818_v2  ;;  %v2402_v3 = vpop.f32.mrb[100].mxu1 }
 0x306   : > { %v2403_v4 = vpop.f32.mrb[101].mxu1 }
 0x307   : > { %v2404_v5 = vadd.f32 %v2403_v4, %v2402_v3  ;;  %v2405_v8 = vpop.f32.mrb[102].mxu1 }
 0x308   : > { %v2406_v9 = vpop.f32.mrb[103].mxu1 }
 0x309   : > { %v1823_v10 = vadd.f32 %v2404_v5, %v3699_v14  ;;  %v2407_v13 = vadd.f32 %v2406_v9, %v2405_v8 }
 0x30b   : > { %2011 = vst [vmem:[%s3703_s7 + $0xb0] sm:$0xff] %v1823_v10  ;;  %v1826_v16 = vadd.f32 %v2407_v13, %v3699_v14 }
 0x30d   : > { %2012 = vst [vmem:[%s3703_s7 + $0xb8] sm:$0xff] %v1826_v16  ;;  %v2408_v17 = vpop.f32.mrb[104].mxu1 }
 0x30e   : > { %v2409_v21 = vpop.f32.mrb[105].mxu1 }
 0x30f   : > { %v2410_v40 = vadd.f32 %v2409_v21, %v2408_v17  ;;  %v2411_v20 = vpop.f32.mrb[106].mxu1 }
 0x310   : > { %v2412_v0 = vpop.f32.mrb[107].mxu1 }
 0x311   : > { %v1831_v15 = vadd.f32 %v2410_v40, %v3699_v14  ;;  %v2413_v28 = vadd.f32 %v2412_v0, %v2411_v20 }
 0x313   : > { %2013 = vst [vmem:[%s3703_s7 + $0xc0] sm:$0xff] %v1831_v15  ;;  %v1834_v29 = vadd.f32 %v2413_v28, %v3699_v14 }
 0x315   : > { %2014 = vst [vmem:[%s3703_s7 + $0xc8] sm:$0xff] %v1834_v29  ;;  %v2414_v37 = vpop.f32.mrb[108].mxu1 }
 0x316   : > { %v2415_v45 = vpop.f32.mrb[109].mxu1 }
 0x317   : > { %v2416_v46 = vadd.f32 %v2415_v45, %v2414_v37  ;;  %v2417_v57 = vpop.f32.mrb[110].mxu1 }
 0x318   : > { %v2418_v58 = vpop.f32.mrb[111].mxu1 }
 0x319   : > { %v1839_v6 = vadd.f32 %v2416_v46, %v3699_v14  ;;  %v2419_v7 = vadd.f32 %v2418_v58, %v2417_v57 }
 0x31b   : > { %2015 = vst [vmem:[%s3703_s7 + $0xd0] sm:$0xff] %v1839_v6  ;;  %v1842_v39 = vadd.f32 %v2419_v7, %v3699_v14 }
 0x31d   : > { %2016 = vst [vmem:[%s3703_s7 + $0xd8] sm:$0xff] %v1842_v39  ;;  %v2420_v18 = vpop.f32.mrb[112].mxu1 }
 0x31e   : > { %v2421_v19 = vpop.f32.mrb[113].mxu1 }
 0x31f   : > { %v2422_v30 = vadd.f32 %v2421_v19, %v2420_v18  ;;  %v2423_v31 = vpop.f32.mrb[114].mxu1 }
 0x320   : > { %v2424_v44 = vpop.f32.mrb[115].mxu1 }
 0x321   : > { %v1847_v47 = vadd.f32 %v2422_v30, %v3699_v14  ;;  %v2425_v60 = vadd.f32 %v2424_v44, %v2423_v31 }
 0x323   : > { %2017 = vst [vmem:[%s3703_s7 + $0xe0] sm:$0xff] %v1847_v47  ;;  %v1850_v61 = vadd.f32 %v2425_v60, %v3699_v14 }
 0x325   : > { %2018 = vst [vmem:[%s3703_s7 + $0xe8] sm:$0xff] %v1850_v61  ;;  %v2426_v11 = vpop.f32.mrb[116].mxu1 }
 0x326   : > { %v2427_v12 = vpop.f32.mrb[117].mxu1 }
 0x327   : > { %v2428_v22 = vadd.f32 %v2427_v12, %v2426_v11  ;;  %v2429_v23 = vpop.f32.mrb[118].mxu1 }
 0x328   : > { %v2430_v50 = vpop.f32.mrb[119].mxu1 }
 0x329   : > { %v1855_v63 = vadd.f32 %v2428_v22, %v3699_v14  ;;  %v2431_v36 = vadd.f32 %v2430_v50, %v2429_v23 }
 0x32b   : > { %2019 = vst [vmem:[%s3703_s7 + $0xf0] sm:$0xff] %v1855_v63  ;;  %v1858_v1 = vadd.f32 %v2431_v36, %v3699_v14 }
 0x32d   : > { %2020 = vst [vmem:[%s3703_s7 + $0xf8] sm:$0xff] %v1858_v1 }
 0x32e   : > { %2810 = shalt.err (!%p2807_p10)
}
 0x32f   : > { %s2811_s30 = scalar_lea.hbm %s3769_s16, 4096  ;;  %s2815_s8 = scalar_lea.hbm %s3824_s6, 8192 }
 0x330   : > { %p2812_p4 = scmp.ne.s32.totalorder %s3769_s16, %s2811_s30  ;;  %p2816_p11 = scmp.lt.u32.totalorder %s3769_s16, %s3824_s6 }
 0x331   : > { %p2817_p1 = scmp.lt.u32.totalorder %s2815_s8, %s2811_s30  ;;  %p2819_p5 = scmp.lt.u32.totalorder %s2811_s30, %s3769_s16 }
 0x332   : > { %p2813_p7 = pnand %p2812_p4, %p3838_p0 }
 0x333   : > { %p2818_p3 = por %p2817_p1, %p2816_p11 }
 0x334   : > { %p2814_p8 = pneg %p2813_p7 }
 0x335   : > { %p2820_p9 = por %p2819_p5, %p2818_p3 }
 0x337   : > { %p2821_p12 = pnand %p2820_p9, %p2814_p8 }
 0x339   : > { %2824 = shalt.err (!%p2821_p12)
}
 0x33a   : > { %s2887_s27 = smov 128   ;;  %s2888_s29 = smov 8  }
 0x33b   : > { %2459 = dma.vmem_to_hbm [thread:$0]  (%p3838_p0), %s3771_s10, 4096, %s3769_s16, %s2027_s25, %s2887_s27, %s2887_s27, %s2888_s29  }
 0x33c PF: > { %s2072_s17 = sand.u32 1, %s2859_s21   ;;  %p3839_p2 = scmp.ne.s32.totalorder %s3829_s28, 0 }
 0x33d   : > { %p3840_p13 = scmp.ge.s32.totalorder %s2871_s24, 2  ;;  %s2073_s18 = scalar_lea.sflag [#allocation4], %s2072_s17 }
 0x33f   : > { %p2474_p6 = pnand %p3840_p13, %p3839_p2 }
 0x341   : > { %2850 = dma.done.wait (!%p2474_p6), %s2073_s18, 16384  }
 0x342   : > { %2852 = vsyncadd (!%p2474_p6), %s2073_s18, 4294950912  ;;  %s2082_s19 = scalar_lea.sflag [#allocation10], %s2072_s17 }
 0x343   : > { %2854 = dma.done.wait (!%p2474_p6), %s2082_s19, 4096  }
 0x344   : > { %2856 = vsyncadd (!%p2474_p6), %s2082_s19, 4294963200  ;;  %p24_p0 = scmp.ge.s32.totalorder %s3034_s26, 4   ;;  %s3841_s21 = smov %s2863_s22 }
 0x345   : > { %s3842_s22 = smov %s2867_s23  ;;  %s3843_s23 = smov %s3043_s11 }
 0x346   : > { %s3844_s24 = smov %s3034_s26  ;;  %26 = sbr.rel (!%p24_p0) target bundleno = 8 (0x8), region = 110 }
 0x34d   :  { %2087 = vsyncpa [#allocation3], 1 }
 0x34e   :  { %2089 = vsyncpa [#allocation3 + $0x1], 1 }
 0x34f   :  { %2090 = vsyncpa [#allocation6], 1 }
 0x350   :  { %2091 = vsyncpa [#allocation4], 1 }
 0x351   :  { %2093 = vsyncpa [#allocation4 + $0x1], 1 }
 0x352   :  { %2094 = vsyncpa [#allocation10], 1 }
 0x353   :  { %2096 = vsyncpa [#allocation10 + $0x1], 1 }

</bundles_post_ra>
